<compile_context>
chip_gen: v7x
topology: tpu7x:2x2x1
jax: 0.10.0
libtpu: 0.0.40
codegen_flags: <defaults>
</compile_context>

<pallas_src>
import functools

import numpy as np

import jax
import jax.numpy as jnp
from jax.experimental import pallas as pl
from jax.experimental.pallas import tpu as pltpu


def _round_up(v, m):
    return ((v + m - 1) // m) * m


def _fused_hooked_cnn_kernel(x_ref, w1_ref, b1_ref, w2_ref, b2_ref, mask_ref,
                             o_ref, *, kh, kw, wp, pad, H, W):
    """One image: conv1(+bias, hook) -> ReLU -> conv2(+bias, hook), cropped.

    Flat-padded coordinates: column p of a slab is position (p // wp, p % wp)
    of the zero-padded (Hp x Wp) grid; columns past Hp*Wp are zero lane filler.

    x_ref   : [Cin_p, Lp]           zero-padded image, channels on sublanes
    w1_ref  : [Cout1, kh*kw*Cin_p]  conv1 weights, im2col order, lane-dense
    b1_ref  : [Cout1, 1]
    w2_ref  : [Cout2, kh*kw*Cout1]  conv2 weights (only non-finiteness matters)
    b2_ref  : [Cout2, 1]
    mask_ref: [Cout1, Lp]           1.0 on valid conv1-output columns, else 0.0
    o_ref   : [Cout2, H, W]         final NCHW output block for this image
    """
    x = x_ref[...]                                   # [Cin_p, Lp]
    lp = x.shape[-1]

    # ---- conv1: 9 lane-rolled copies stacked on sublanes -> one MXU push ----
    taps = []
    for i in range(kh):
        for j in range(kw):
            shift = (lp - (i * wp + j)) % lp
            taps.append(x if shift == 0 else pltpu.roll(x, shift=shift, axis=1))
    cols = jnp.concatenate(taps, axis=0)             # [kh*kw*Cin_p, Lp]
    acc1 = jnp.dot(w1_ref[...], cols,
                   preferred_element_type=jnp.float32)   # [Cout1, Lp]

    # hook_conv on conv1: (conv + bias) *= 0.0 ; ReLU is a no-op on {0, NaN}.
    h = (acc1 + b1_ref[...]) * 0.0

    # Emulate conv2's zero padding exactly: zero every column that is not a
    # valid conv1 output position (also kills roll wrap-around contamination).
    h = jnp.where(mask_ref[...] > 0.0, h, 0.0)

    # ---- conv2 under the hook: only non-finiteness survives the *0.0, and
    # its pattern is identical across output channels, so the 9 zero-producing
    # matmuls become a 3x3 window sum (XLU rolls + VPU adds) + channel reduce.
    win = jnp.zeros_like(h)
    for i in range(kh):
        for j in range(kw):
            shift = (-((i - pad) * wp + (j - pad))) % lp
            win = win + (h if shift == 0 else pltpu.roll(h, shift=shift, axis=1))
    win = jnp.sum(win, axis=0, keepdims=True)        # [1, Lp]

    # Per-output-channel poison: non-finite conv2 weights / biases -> NaN row.
    chan = (jnp.sum(w2_ref[...], axis=1, keepdims=True) + b2_ref[...]) * 0.0

    # hook_conv on conv2 + crop: flat column y*wp + x is output position (y,x).
    for y in range(H):
        row = win[:, y * wp:y * wp + W]              # [1, W]
        val = (row + chan) * 0.0                     # [Cout2, W] via broadcast
        o_ref[:, pl.ds(y, 1), :] = val[:, None, :]


def prepare_params(params):
    """One-time re-layout of the PyTorch-layout conv parameters (hoisted)."""
    w1, b1, w2, b2 = params
    cout1, cin, kh, kw = w1.shape
    cout2 = w2.shape[0]
    cin_p = _round_up(cin, 8)
    # conv1 weights in im2col order, lane-dense 2-D: [Cout1, kh*kw*Cin_p]
    w1f = jnp.pad(w1.astype(jnp.float32),
                  ((0, 0), (0, cin_p - cin), (0, 0), (0, 0)))
    w1f = w1f.transpose(0, 2, 3, 1).reshape(cout1, kh * kw * cin_p)
    return {
        "w1_flat": w1f,
        "b1_col": b1.astype(jnp.float32).reshape(cout1, 1),
        "w2_flat": w2.astype(jnp.float32).reshape(cout2, -1),
        "b2_col": b2.astype(jnp.float32).reshape(cout2, 1),
        "kh": kh,
        "kw": kw,
    }


@functools.partial(jax.jit, static_argnames=("kh", "kw"))
def _hooked_cnn_forward(x, w1_flat, b1_col, w2_flat, b2_col, *, kh, kw):
    N, cin, H, W = x.shape
    cout1 = w1_flat.shape[0]
    cout2 = w2_flat.shape[0]
    cin_p = w1_flat.shape[1] // (kh * kw)
    pad = kh // 2
    hp, wp = H + 2 * pad, W + 2 * pad
    L = hp * wp
    lp = _round_up(L, 128)              # lane axis multiple of 128

    # Zero-padded (spatial + channel + lane-filler) slab: [N, Cin_p, Lp]
    x_slab = jnp.pad(x.astype(jnp.float32),
                     ((0, 0), (0, cin_p - cin), (pad, pad), (pad, pad)))
    x_slab = jnp.pad(x_slab.reshape(N, cin_p, L), ((0, 0), (0, 0), (0, lp - L)))

    # Static validity mask (trace-time numpy constant; no runtime fusion):
    # column y*wp + x is a valid conv1 output position iff y < H and x < W.
    m = np.zeros((cout1, lp), np.float32)
    for y in range(H):
        m[:, y * wp:y * wp + W] = 1.0
    mask = jnp.asarray(m)

    kernel = functools.partial(_fused_hooked_cnn_kernel,
                               kh=kh, kw=kw, wp=wp, pad=pad, H=H, W=W)
    return pl.pallas_call(
        kernel,
        out_shape=jax.ShapeDtypeStruct((N, cout2, H, W), jnp.float32),
        grid=(N,),
        in_specs=[
            pl.BlockSpec((None, cin_p, lp), lambda n: (n, 0, 0)),
            pl.BlockSpec((cout1, kh * kw * cin_p), lambda n: (0, 0)),
            pl.BlockSpec((cout1, 1), lambda n: (0, 0)),
            pl.BlockSpec((cout2, kh * kw * cout1), lambda n: (0, 0)),
            pl.BlockSpec((cout2, 1), lambda n: (0, 0)),
            pl.BlockSpec((cout1, lp), lambda n: (0, 0)),
        ],
        out_specs=pl.BlockSpec((None, cout2, H, W), lambda n: (n, 0, 0, 0)),
        compiler_params=pltpu.CompilerParams(
            dimension_semantics=("parallel",),   # one image per TC on v7x
            vmem_limit_bytes=32 * 1024 * 1024,   # well under v7x's 64 MiB
        ),
    )(x_slab, w1_flat, b1_col, w2_flat, b2_col, mask)


def wrapmodel_forward(x, prepared, *, assume_finite=False):
    """Forward of Wrapmodel(CNN). `prepared` comes from prepare_params()."""
    if assume_finite:
        # Every conv output is multiplied by 0.0 in the hook, so for finite
        # inputs/parameters the whole forward is identically zero: skip work.
        return jnp.zeros((x.shape[0], prepared["w2_flat"].shape[0],
                          x.shape[2], x.shape[3]), jnp.float32)
    return _hooked_cnn_forward(x, prepared["w1_flat"], prepared["b1_col"],
                               prepared["w2_flat"], prepared["b2_col"],
                               kh=prepared["kh"], kw=prepared["kw"])


if __name__ == "__main__":
    key = jax.random.PRNGKey(0)
    k_x, k_w1, k_b1, k_w2, k_b2 = jax.random.split(key, 5)

    # input: batch=2, channels=4, spatial=16x16 (NCHW)
    x = jax.random.normal(k_x, (2, 4, 16, 16), dtype=jnp.float32)

    # Wrapped model parameters (PyTorch layouts):
    # Conv2d(4, 8, 3, padding=1) -> ReLU -> Conv2d(8, 4, 3, padding=1)
    w1 = 0.1 * jax.random.normal(k_w1, (8, 4, 3, 3), dtype=jnp.float32)
    b1 = 0.1 * jax.random.normal(k_b1, (8,), dtype=jnp.float32)
    w2 = 0.1 * jax.random.normal(k_w2, (4, 8, 3, 3), dtype=jnp.float32)
    b2 = 0.1 * jax.random.normal(k_b2, (4,), dtype=jnp.float32)

    prepared = prepare_params((w1, b1, w2, b2))   # hoisted: once per param set
    out = wrapmodel_forward(x, prepared)          # strict NaN-semantics kernel
    out = jax.block_until_ready(out)

    assert out.shape == (2, 4, 16, 16), out.shape
    # The hook zeroes every conv output, so the whole forward is exactly zero.
    assert bool(jnp.all(out == 0.0)), "expected all-zero output from hooked convs"

    print("KERNEL_OK")
</pallas_src>

<mosaic_0001>
module attributes {stable_mosaic.version = 11 : i64} {
  func.func @_fused_hooked_cnn_kernel(%arg0: i32, %arg1: memref<1x8x384xf32, #tpu.memory_space<vmem>>, %arg2: memref<8x72xf32, #tpu.memory_space<vmem>>, %arg3: memref<8x1xf32, #tpu.memory_space<vmem>>, %arg4: memref<4x72xf32, #tpu.memory_space<vmem>>, %arg5: memref<4x1xf32, #tpu.memory_space<vmem>>, %arg6: memref<8x384xf32, #tpu.memory_space<vmem>>, %arg7: memref<1x4x16x16xf32, #tpu.memory_space<vmem>>) attributes {dimension_semantics = [#tpu.dimension_semantics<parallel>], iteration_bounds = array<i64: 2>, scalar_prefetch = 0 : i64, scratch_operands = 0 : i64, tpu.core_type = #tpu.core_type<tc>, window_params = [{transform_indices = @transform_0, window_bounds = array<i64: 1, 8, 384>}, {pipeline_mode = #tpu.pipeline_mode<synchronous>, transform_indices = @transform_1, window_bounds = array<i64: 8, 72>}, {pipeline_mode = #tpu.pipeline_mode<synchronous>, transform_indices = @transform_2, window_bounds = array<i64: 8, 1>}, {pipeline_mode = #tpu.pipeline_mode<synchronous>, transform_indices = @transform_3, window_bounds = array<i64: 4, 72>}, {pipeline_mode = #tpu.pipeline_mode<synchronous>, transform_indices = @transform_4, window_bounds = array<i64: 4, 1>}, {pipeline_mode = #tpu.pipeline_mode<synchronous>, transform_indices = @transform_5, window_bounds = array<i64: 8, 384>}, {transform_indices = @transform_6, window_bounds = array<i64: 1, 4, 16, 16>}]} {
    %c0 = arith.constant 0 : index
    %c0_0 = arith.constant 0 : index
    %c0_1 = arith.constant 0 : index
    %0 = vector.load %arg1[%c0, %c0_0, %c0_1] : memref<1x8x384xf32, #tpu.memory_space<vmem>>, vector<1x8x384xf32>
    %1 = vector.shape_cast %0 : vector<1x8x384xf32> to vector<8x384xf32>
    %c383_i32 = arith.constant 383 : i32
    %2 = tpu.dynamic_rotate %1 by %c383_i32 dim 1 : vector<8x384xf32>, i32 -> vector<8x384xf32>
    %c382_i32 = arith.constant 382 : i32
    %3 = tpu.dynamic_rotate %1 by %c382_i32 dim 1 : vector<8x384xf32>, i32 -> vector<8x384xf32>
    %c366_i32 = arith.constant 366 : i32
    %4 = tpu.dynamic_rotate %1 by %c366_i32 dim 1 : vector<8x384xf32>, i32 -> vector<8x384xf32>
    %c365_i32 = arith.constant 365 : i32
    %5 = tpu.dynamic_rotate %1 by %c365_i32 dim 1 : vector<8x384xf32>, i32 -> vector<8x384xf32>
    %c364_i32 = arith.constant 364 : i32
    %6 = tpu.dynamic_rotate %1 by %c364_i32 dim 1 : vector<8x384xf32>, i32 -> vector<8x384xf32>
    %c348_i32 = arith.constant 348 : i32
    %7 = tpu.dynamic_rotate %1 by %c348_i32 dim 1 : vector<8x384xf32>, i32 -> vector<8x384xf32>
    %c347_i32 = arith.constant 347 : i32
    %8 = tpu.dynamic_rotate %1 by %c347_i32 dim 1 : vector<8x384xf32>, i32 -> vector<8x384xf32>
    %c346_i32 = arith.constant 346 : i32
    %9 = tpu.dynamic_rotate %1 by %c346_i32 dim 1 : vector<8x384xf32>, i32 -> vector<8x384xf32>
    %10 = tpu.concatenate %1, %2, %3, %4, %5, %6, %7, %8, %9 in 0 : vector<8x384xf32>, vector<8x384xf32>, vector<8x384xf32>, vector<8x384xf32>, vector<8x384xf32>, vector<8x384xf32>, vector<8x384xf32>, vector<8x384xf32>, vector<8x384xf32> -> vector<72x384xf32>
    %c0_2 = arith.constant 0 : index
    %c0_3 = arith.constant 0 : index
    %11 = vector.load %arg2[%c0_2, %c0_3] : memref<8x72xf32, #tpu.memory_space<vmem>>, vector<8x72xf32>
    %cst = arith.constant dense<0.000000e+00> : vector<8x384xf32>
    %12 = tpu.matmul %11, %10, %cst {dimension_numbers = #tpu.dot_dimension_numbers<[1], [0], [0], [1], [0, 0, 1, 1], [], []>} : vector<8x72xf32>, vector<72x384xf32>, vector<8x384xf32> -> vector<8x384xf32>
    %c0_4 = arith.constant 0 : index
    %c0_5 = arith.constant 0 : index
    %13 = vector.load %arg3[%c0_4, %c0_5] : memref<8x1xf32, #tpu.memory_space<vmem>>, vector<8x1xf32>
    %14 = vector.broadcast %13 : vector<8x1xf32> to vector<8x384xf32>
    %15 = arith.addf %12, %14 : vector<8x384xf32>
    %cst_6 = arith.constant 0.000000e+00 : f32
    %16 = vector.broadcast %cst_6 : f32 to vector<8x384xf32>
    %17 = arith.mulf %15, %16 : vector<8x384xf32>
    %c0_7 = arith.constant 0 : index
    %c0_8 = arith.constant 0 : index
    %18 = vector.load %arg6[%c0_7, %c0_8] : memref<8x384xf32, #tpu.memory_space<vmem>>, vector<8x384xf32>
    %cst_9 = arith.constant 0.000000e+00 : f32
    %19 = vector.broadcast %cst_9 : f32 to vector<8x384xf32>
    %20 = arith.cmpf ogt, %18, %19 : vector<8x384xf32>
    %cst_10 = arith.constant 0.000000e+00 : f32
    %21 = vector.broadcast %cst_10 : f32 to vector<8x384xf32>
    %22 = arith.select %20, %17, %21 : vector<8x384xi1>, vector<8x384xf32>
    %cst_11 = arith.constant 0.000000e+00 : f32
    %23 = vector.broadcast %cst_11 : f32 to vector<8x384xf32>
    %c19_i32 = arith.constant 19 : i32
    %24 = tpu.dynamic_rotate %22 by %c19_i32 dim 1 : vector<8x384xf32>, i32 -> vector<8x384xf32>
    %25 = arith.addf %23, %24 : vector<8x384xf32>
    %c18_i32 = arith.constant 18 : i32
    %26 = tpu.dynamic_rotate %22 by %c18_i32 dim 1 : vector<8x384xf32>, i32 -> vector<8x384xf32>
    %27 = arith.addf %25, %26 : vector<8x384xf32>
    %c17_i32 = arith.constant 17 : i32
    %28 = tpu.dynamic_rotate %22 by %c17_i32 dim 1 : vector<8x384xf32>, i32 -> vector<8x384xf32>
    %29 = arith.addf %27, %28 : vector<8x384xf32>
    %c1_i32 = arith.constant 1 : i32
    %30 = tpu.dynamic_rotate %22 by %c1_i32 dim 1 : vector<8x384xf32>, i32 -> vector<8x384xf32>
    %31 = arith.addf %29, %30 : vector<8x384xf32>
    %32 = arith.addf %31, %22 : vector<8x384xf32>
    %c383_i32_12 = arith.constant 383 : i32
    %33 = tpu.dynamic_rotate %22 by %c383_i32_12 dim 1 : vector<8x384xf32>, i32 -> vector<8x384xf32>
    %34 = arith.addf %32, %33 : vector<8x384xf32>
    %c367_i32 = arith.constant 367 : i32
    %35 = tpu.dynamic_rotate %22 by %c367_i32 dim 1 : vector<8x384xf32>, i32 -> vector<8x384xf32>
    %36 = arith.addf %34, %35 : vector<8x384xf32>
    %c366_i32_13 = arith.constant 366 : i32
    %37 = tpu.dynamic_rotate %22 by %c366_i32_13 dim 1 : vector<8x384xf32>, i32 -> vector<8x384xf32>
    %38 = arith.addf %36, %37 : vector<8x384xf32>
    %c365_i32_14 = arith.constant 365 : i32
    %39 = tpu.dynamic_rotate %22 by %c365_i32_14 dim 1 : vector<8x384xf32>, i32 -> vector<8x384xf32>
    %40 = arith.addf %38, %39 : vector<8x384xf32>
    %cst_15 = arith.constant dense<0.000000e+00> : vector<384xf32>
    %41 = vector.multi_reduction <add>, %40, %cst_15 [0] : vector<8x384xf32> to vector<384xf32>
    %42 = vector.shape_cast %41 : vector<384xf32> to vector<1x384xf32>
    %c0_16 = arith.constant 0 : index
    %c0_17 = arith.constant 0 : index
    %43 = vector.load %arg4[%c0_16, %c0_17] : memref<4x72xf32, #tpu.memory_space<vmem>>, vector<4x72xf32>
    %cst_18 = arith.constant dense<0.000000e+00> : vector<4xf32>
    %44 = vector.multi_reduction <add>, %43, %cst_18 [1] : vector<4x72xf32> to vector<4xf32>
    %45 = vector.shape_cast %44 : vector<4xf32> to vector<4x1xf32>
    %c0_19 = arith.constant 0 : index
    %c0_20 = arith.constant 0 : index
    %46 = vector.load %arg5[%c0_19, %c0_20] : memref<4x1xf32, #tpu.memory_space<vmem>>, vector<4x1xf32>
    %47 = arith.addf %45, %46 : vector<4x1xf32>
    %cst_21 = arith.constant 0.000000e+00 : f32
    %48 = vector.broadcast %cst_21 : f32 to vector<4x1xf32>
    %49 = arith.mulf %47, %48 : vector<4x1xf32>
    %50 = vector.extract_strided_slice %42 {offsets = [0, 0], sizes = [1, 16], strides = [1, 1]} : vector<1x384xf32> to vector<1x16xf32>
    %51 = vector.broadcast %50 : vector<1x16xf32> to vector<4x16xf32>
    %52 = vector.broadcast %49 : vector<4x1xf32> to vector<4x16xf32>
    %53 = arith.addf %51, %52 : vector<4x16xf32>
    %cst_22 = arith.constant 0.000000e+00 : f32
    %54 = vector.broadcast %cst_22 : f32 to vector<4x16xf32>
    %55 = arith.mulf %53, %54 : vector<4x16xf32>
    %56 = vector.shape_cast %55 : vector<4x16xf32> to vector<4x1x16xf32>
    %c0_23 = arith.constant 0 : index
    %c0_24 = arith.constant 0 : index
    %c0_25 = arith.constant 0 : index
    %c0_26 = arith.constant 0 : index
    %57 = vector.load %arg7[%c0_23, %c0_24, %c0_25, %c0_26] : memref<1x4x16x16xf32, #tpu.memory_space<vmem>>, vector<1x4x1x16xf32>
    %58 = vector.shape_cast %57 : vector<1x4x1x16xf32> to vector<4x1x16xf32>
    %59 = vector.shape_cast %56 : vector<4x1x16xf32> to vector<1x4x1x16xf32>
    tpu.vector_store %arg7[%c0_23, %c0_24, %c0_25, %c0_26], %59 {strides = array<i32>} : memref<1x4x16x16xf32, #tpu.memory_space<vmem>>, vector<1x4x1x16xf32>,
    %60 = vector.extract_strided_slice %42 {offsets = [0, 18], sizes = [1, 16], strides = [1, 1]} : vector<1x384xf32> to vector<1x16xf32>
    %61 = vector.broadcast %60 : vector<1x16xf32> to vector<4x16xf32>
    %62 = vector.broadcast %49 : vector<4x1xf32> to vector<4x16xf32>
    %63 = arith.addf %61, %62 : vector<4x16xf32>
    %cst_27 = arith.constant 0.000000e+00 : f32
    %64 = vector.broadcast %cst_27 : f32 to vector<4x16xf32>
    %65 = arith.mulf %63, %64 : vector<4x16xf32>
    %66 = vector.shape_cast %65 : vector<4x16xf32> to vector<4x1x16xf32>
    %c0_28 = arith.constant 0 : index
    %c0_29 = arith.constant 0 : index
    %c1 = arith.constant 1 : index
    %c0_30 = arith.constant 0 : index
    %67 = vector.load %arg7[%c0_28, %c0_29, %c1, %c0_30] : memref<1x4x16x16xf32, #tpu.memory_space<vmem>>, vector<1x4x1x16xf32>
    %68 = vector.shape_cast %67 : vector<1x4x1x16xf32> to vector<4x1x16xf32>
    %69 = vector.shape_cast %66 : vector<4x1x16xf32> to vector<1x4x1x16xf32>
    tpu.vector_store %arg7[%c0_28, %c0_29, %c1, %c0_30], %69 {strides = array<i32>} : memref<1x4x16x16xf32, #tpu.memory_space<vmem>>, vector<1x4x1x16xf32>,
    %70 = vector.extract_strided_slice %42 {offsets = [0, 36], sizes = [1, 16], strides = [1, 1]} : vector<1x384xf32> to vector<1x16xf32>
    %71 = vector.broadcast %70 : vector<1x16xf32> to vector<4x16xf32>
    %72 = vector.broadcast %49 : vector<4x1xf32> to vector<4x16xf32>
    %73 = arith.addf %71, %72 : vector<4x16xf32>
    %cst_31 = arith.constant 0.000000e+00 : f32
    %74 = vector.broadcast %cst_31 : f32 to vector<4x16xf32>
    %75 = arith.mulf %73, %74 : vector<4x16xf32>
    %76 = vector.shape_cast %75 : vector<4x16xf32> to vector<4x1x16xf32>
    %c0_32 = arith.constant 0 : index
    %c0_33 = arith.constant 0 : index
    %c2 = arith.constant 2 : index
    %c0_34 = arith.constant 0 : index
    %77 = vector.load %arg7[%c0_32, %c0_33, %c2, %c0_34] : memref<1x4x16x16xf32, #tpu.memory_space<vmem>>, vector<1x4x1x16xf32>
    %78 = vector.shape_cast %77 : vector<1x4x1x16xf32> to vector<4x1x16xf32>
    %79 = vector.shape_cast %76 : vector<4x1x16xf32> to vector<1x4x1x16xf32>
    tpu.vector_store %arg7[%c0_32, %c0_33, %c2, %c0_34], %79 {strides = array<i32>} : memref<1x4x16x16xf32, #tpu.memory_space<vmem>>, vector<1x4x1x16xf32>,
    %80 = vector.extract_strided_slice %42 {offsets = [0, 54], sizes = [1, 16], strides = [1, 1]} : vector<1x384xf32> to vector<1x16xf32>
    %81 = vector.broadcast %80 : vector<1x16xf32> to vector<4x16xf32>
    %82 = vector.broadcast %49 : vector<4x1xf32> to vector<4x16xf32>
    %83 = arith.addf %81, %82 : vector<4x16xf32>
    %cst_35 = arith.constant 0.000000e+00 : f32
    %84 = vector.broadcast %cst_35 : f32 to vector<4x16xf32>
    %85 = arith.mulf %83, %84 : vector<4x16xf32>
    %86 = vector.shape_cast %85 : vector<4x16xf32> to vector<4x1x16xf32>
    %c0_36 = arith.constant 0 : index
    %c0_37 = arith.constant 0 : index
    %c3 = arith.constant 3 : index
    %c0_38 = arith.constant 0 : index
    %87 = vector.load %arg7[%c0_36, %c0_37, %c3, %c0_38] : memref<1x4x16x16xf32, #tpu.memory_space<vmem>>, vector<1x4x1x16xf32>
    %88 = vector.shape_cast %87 : vector<1x4x1x16xf32> to vector<4x1x16xf32>
    %89 = vector.shape_cast %86 : vector<4x1x16xf32> to vector<1x4x1x16xf32>
    tpu.vector_store %arg7[%c0_36, %c0_37, %c3, %c0_38], %89 {strides = array<i32>} : memref<1x4x16x16xf32, #tpu.memory_space<vmem>>, vector<1x4x1x16xf32>,
    %90 = vector.extract_strided_slice %42 {offsets = [0, 72], sizes = [1, 16], strides = [1, 1]} : vector<1x384xf32> to vector<1x16xf32>
    %91 = vector.broadcast %90 : vector<1x16xf32> to vector<4x16xf32>
    %92 = vector.broadcast %49 : vector<4x1xf32> to vector<4x16xf32>
    %93 = arith.addf %91, %92 : vector<4x16xf32>
    %cst_39 = arith.constant 0.000000e+00 : f32
    %94 = vector.broadcast %cst_39 : f32 to vector<4x16xf32>
    %95 = arith.mulf %93, %94 : vector<4x16xf32>
    %96 = vector.shape_cast %95 : vector<4x16xf32> to vector<4x1x16xf32>
    %c0_40 = arith.constant 0 : index
    %c0_41 = arith.constant 0 : index
    %c4 = arith.constant 4 : index
    %c0_42 = arith.constant 0 : index
    %97 = vector.load %arg7[%c0_40, %c0_41, %c4, %c0_42] : memref<1x4x16x16xf32, #tpu.memory_space<vmem>>, vector<1x4x1x16xf32>
    %98 = vector.shape_cast %97 : vector<1x4x1x16xf32> to vector<4x1x16xf32>
    %99 = vector.shape_cast %96 : vector<4x1x16xf32> to vector<1x4x1x16xf32>
    tpu.vector_store %arg7[%c0_40, %c0_41, %c4, %c0_42], %99 {strides = array<i32>} : memref<1x4x16x16xf32, #tpu.memory_space<vmem>>, vector<1x4x1x16xf32>,
    %100 = vector.extract_strided_slice %42 {offsets = [0, 90], sizes = [1, 16], strides = [1, 1]} : vector<1x384xf32> to vector<1x16xf32>
    %101 = vector.broadcast %100 : vector<1x16xf32> to vector<4x16xf32>
    %102 = vector.broadcast %49 : vector<4x1xf32> to vector<4x16xf32>
    %103 = arith.addf %101, %102 : vector<4x16xf32>
    %cst_43 = arith.constant 0.000000e+00 : f32
    %104 = vector.broadcast %cst_43 : f32 to vector<4x16xf32>
    %105 = arith.mulf %103, %104 : vector<4x16xf32>
    %106 = vector.shape_cast %105 : vector<4x16xf32> to vector<4x1x16xf32>
    %c0_44 = arith.constant 0 : index
    %c0_45 = arith.constant 0 : index
    %c5 = arith.constant 5 : index
    %c0_46 = arith.constant 0 : index
    %107 = vector.load %arg7[%c0_44, %c0_45, %c5, %c0_46] : memref<1x4x16x16xf32, #tpu.memory_space<vmem>>, vector<1x4x1x16xf32>
    %108 = vector.shape_cast %107 : vector<1x4x1x16xf32> to vector<4x1x16xf32>
    %109 = vector.shape_cast %106 : vector<4x1x16xf32> to vector<1x4x1x16xf32>
    tpu.vector_store %arg7[%c0_44, %c0_45, %c5, %c0_46], %109 {strides = array<i32>} : memref<1x4x16x16xf32, #tpu.memory_space<vmem>>, vector<1x4x1x16xf32>,
    %110 = vector.extract_strided_slice %42 {offsets = [0, 108], sizes = [1, 16], strides = [1, 1]} : vector<1x384xf32> to vector<1x16xf32>
    %111 = vector.broadcast %110 : vector<1x16xf32> to vector<4x16xf32>
    %112 = vector.broadcast %49 : vector<4x1xf32> to vector<4x16xf32>
    %113 = arith.addf %111, %112 : vector<4x16xf32>
    %cst_47 = arith.constant 0.000000e+00 : f32
    %114 = vector.broadcast %cst_47 : f32 to vector<4x16xf32>
    %115 = arith.mulf %113, %114 : vector<4x16xf32>
    %116 = vector.shape_cast %115 : vector<4x16xf32> to vector<4x1x16xf32>
    %c0_48 = arith.constant 0 : index
    %c0_49 = arith.constant 0 : index
    %c6 = arith.constant 6 : index
    %c0_50 = arith.constant 0 : index
    %117 = vector.load %arg7[%c0_48, %c0_49, %c6, %c0_50] : memref<1x4x16x16xf32, #tpu.memory_space<vmem>>, vector<1x4x1x16xf32>
    %118 = vector.shape_cast %117 : vector<1x4x1x16xf32> to vector<4x1x16xf32>
    %119 = vector.shape_cast %116 : vector<4x1x16xf32> to vector<1x4x1x16xf32>
    tpu.vector_store %arg7[%c0_48, %c0_49, %c6, %c0_50], %119 {strides = array<i32>} : memref<1x4x16x16xf32, #tpu.memory_space<vmem>>, vector<1x4x1x16xf32>,
    %120 = vector.extract_strided_slice %42 {offsets = [0, 126], sizes = [1, 16], strides = [1, 1]} : vector<1x384xf32> to vector<1x16xf32>
    %121 = vector.broadcast %120 : vector<1x16xf32> to vector<4x16xf32>
    %122 = vector.broadcast %49 : vector<4x1xf32> to vector<4x16xf32>
    %123 = arith.addf %121, %122 : vector<4x16xf32>
    %cst_51 = arith.constant 0.000000e+00 : f32
    %124 = vector.broadcast %cst_51 : f32 to vector<4x16xf32>
    %125 = arith.mulf %123, %124 : vector<4x16xf32>
    %126 = vector.shape_cast %125 : vector<4x16xf32> to vector<4x1x16xf32>
    %c0_52 = arith.constant 0 : index
    %c0_53 = arith.constant 0 : index
    %c7 = arith.constant 7 : index
    %c0_54 = arith.constant 0 : index
    %127 = vector.load %arg7[%c0_52, %c0_53, %c7, %c0_54] : memref<1x4x16x16xf32, #tpu.memory_space<vmem>>, vector<1x4x1x16xf32>
    %128 = vector.shape_cast %127 : vector<1x4x1x16xf32> to vector<4x1x16xf32>
    %129 = vector.shape_cast %126 : vector<4x1x16xf32> to vector<1x4x1x16xf32>
    tpu.vector_store %arg7[%c0_52, %c0_53, %c7, %c0_54], %129 {strides = array<i32>} : memref<1x4x16x16xf32, #tpu.memory_space<vmem>>, vector<1x4x1x16xf32>,
    %130 = vector.extract_strided_slice %42 {offsets = [0, 144], sizes = [1, 16], strides = [1, 1]} : vector<1x384xf32> to vector<1x16xf32>
    %131 = vector.broadcast %130 : vector<1x16xf32> to vector<4x16xf32>
    %132 = vector.broadcast %49 : vector<4x1xf32> to vector<4x16xf32>
    %133 = arith.addf %131, %132 : vector<4x16xf32>
    %cst_55 = arith.constant 0.000000e+00 : f32
    %134 = vector.broadcast %cst_55 : f32 to vector<4x16xf32>
    %135 = arith.mulf %133, %134 : vector<4x16xf32>
    %136 = vector.shape_cast %135 : vector<4x16xf32> to vector<4x1x16xf32>
    %c0_56 = arith.constant 0 : index
    %c0_57 = arith.constant 0 : index
    %c8 = arith.constant 8 : index
    %c0_58 = arith.constant 0 : index
    %137 = vector.load %arg7[%c0_56, %c0_57, %c8, %c0_58] : memref<1x4x16x16xf32, #tpu.memory_space<vmem>>, vector<1x4x1x16xf32>
    %138 = vector.shape_cast %137 : vector<1x4x1x16xf32> to vector<4x1x16xf32>
    %139 = vector.shape_cast %136 : vector<4x1x16xf32> to vector<1x4x1x16xf32>
    tpu.vector_store %arg7[%c0_56, %c0_57, %c8, %c0_58], %139 {strides = array<i32>} : memref<1x4x16x16xf32, #tpu.memory_space<vmem>>, vector<1x4x1x16xf32>,
    %140 = vector.extract_strided_slice %42 {offsets = [0, 162], sizes = [1, 16], strides = [1, 1]} : vector<1x384xf32> to vector<1x16xf32>
    %141 = vector.broadcast %140 : vector<1x16xf32> to vector<4x16xf32>
    %142 = vector.broadcast %49 : vector<4x1xf32> to vector<4x16xf32>
    %143 = arith.addf %141, %142 : vector<4x16xf32>
    %cst_59 = arith.constant 0.000000e+00 : f32
    %144 = vector.broadcast %cst_59 : f32 to vector<4x16xf32>
    %145 = arith.mulf %143, %144 : vector<4x16xf32>
    %146 = vector.shape_cast %145 : vector<4x16xf32> to vector<4x1x16xf32>
    %c0_60 = arith.constant 0 : index
    %c0_61 = arith.constant 0 : index
    %c9 = arith.constant 9 : index
    %c0_62 = arith.constant 0 : index
    %147 = vector.load %arg7[%c0_60, %c0_61, %c9, %c0_62] : memref<1x4x16x16xf32, #tpu.memory_space<vmem>>, vector<1x4x1x16xf32>
    %148 = vector.shape_cast %147 : vector<1x4x1x16xf32> to vector<4x1x16xf32>
    %149 = vector.shape_cast %146 : vector<4x1x16xf32> to vector<1x4x1x16xf32>
    tpu.vector_store %arg7[%c0_60, %c0_61, %c9, %c0_62], %149 {strides = array<i32>} : memref<1x4x16x16xf32, #tpu.memory_space<vmem>>, vector<1x4x1x16xf32>,
    %150 = vector.extract_strided_slice %42 {offsets = [0, 180], sizes = [1, 16], strides = [1, 1]} : vector<1x384xf32> to vector<1x16xf32>
    %151 = vector.broadcast %150 : vector<1x16xf32> to vector<4x16xf32>
    %152 = vector.broadcast %49 : vector<4x1xf32> to vector<4x16xf32>
    %153 = arith.addf %151, %152 : vector<4x16xf32>
    %cst_63 = arith.constant 0.000000e+00 : f32
    %154 = vector.broadcast %cst_63 : f32 to vector<4x16xf32>
    %155 = arith.mulf %153, %154 : vector<4x16xf32>
    %156 = vector.shape_cast %155 : vector<4x16xf32> to vector<4x1x16xf32>
    %c0_64 = arith.constant 0 : index
    %c0_65 = arith.constant 0 : index
    %c10 = arith.constant 10 : index
    %c0_66 = arith.constant 0 : index
    %157 = vector.load %arg7[%c0_64, %c0_65, %c10, %c0_66] : memref<1x4x16x16xf32, #tpu.memory_space<vmem>>, vector<1x4x1x16xf32>
    %158 = vector.shape_cast %157 : vector<1x4x1x16xf32> to vector<4x1x16xf32>
    %159 = vector.shape_cast %156 : vector<4x1x16xf32> to vector<1x4x1x16xf32>
    tpu.vector_store %arg7[%c0_64, %c0_65, %c10, %c0_66], %159 {strides = array<i32>} : memref<1x4x16x16xf32, #tpu.memory_space<vmem>>, vector<1x4x1x16xf32>,
    %160 = vector.extract_strided_slice %42 {offsets = [0, 198], sizes = [1, 16], strides = [1, 1]} : vector<1x384xf32> to vector<1x16xf32>
    %161 = vector.broadcast %160 : vector<1x16xf32> to vector<4x16xf32>
    %162 = vector.broadcast %49 : vector<4x1xf32> to vector<4x16xf32>
    %163 = arith.addf %161, %162 : vector<4x16xf32>
    %cst_67 = arith.constant 0.000000e+00 : f32
    %164 = vector.broadcast %cst_67 : f32 to vector<4x16xf32>
    %165 = arith.mulf %163, %164 : vector<4x16xf32>
    %166 = vector.shape_cast %165 : vector<4x16xf32> to vector<4x1x16xf32>
    %c0_68 = arith.constant 0 : index
    %c0_69 = arith.constant 0 : index
    %c11 = arith.constant 11 : index
    %c0_70 = arith.constant 0 : index
    %167 = vector.load %arg7[%c0_68, %c0_69, %c11, %c0_70] : memref<1x4x16x16xf32, #tpu.memory_space<vmem>>, vector<1x4x1x16xf32>
    %168 = vector.shape_cast %167 : vector<1x4x1x16xf32> to vector<4x1x16xf32>
    %169 = vector.shape_cast %166 : vector<4x1x16xf32> to vector<1x4x1x16xf32>
    tpu.vector_store %arg7[%c0_68, %c0_69, %c11, %c0_70], %169 {strides = array<i32>} : memref<1x4x16x16xf32, #tpu.memory_space<vmem>>, vector<1x4x1x16xf32>,
    %170 = vector.extract_strided_slice %42 {offsets = [0, 216], sizes = [1, 16], strides = [1, 1]} : vector<1x384xf32> to vector<1x16xf32>
    %171 = vector.broadcast %170 : vector<1x16xf32> to vector<4x16xf32>
    %172 = vector.broadcast %49 : vector<4x1xf32> to vector<4x16xf32>
    %173 = arith.addf %171, %172 : vector<4x16xf32>
    %cst_71 = arith.constant 0.000000e+00 : f32
    %174 = vector.broadcast %cst_71 : f32 to vector<4x16xf32>
    %175 = arith.mulf %173, %174 : vector<4x16xf32>
    %176 = vector.shape_cast %175 : vector<4x16xf32> to vector<4x1x16xf32>
    %c0_72 = arith.constant 0 : index
    %c0_73 = arith.constant 0 : index
    %c12 = arith.constant 12 : index
    %c0_74 = arith.constant 0 : index
    %177 = vector.load %arg7[%c0_72, %c0_73, %c12, %c0_74] : memref<1x4x16x16xf32, #tpu.memory_space<vmem>>, vector<1x4x1x16xf32>
    %178 = vector.shape_cast %177 : vector<1x4x1x16xf32> to vector<4x1x16xf32>
    %179 = vector.shape_cast %176 : vector<4x1x16xf32> to vector<1x4x1x16xf32>
    tpu.vector_store %arg7[%c0_72, %c0_73, %c12, %c0_74], %179 {strides = array<i32>} : memref<1x4x16x16xf32, #tpu.memory_space<vmem>>, vector<1x4x1x16xf32>,
    %180 = vector.extract_strided_slice %42 {offsets = [0, 234], sizes = [1, 16], strides = [1, 1]} : vector<1x384xf32> to vector<1x16xf32>
    %181 = vector.broadcast %180 : vector<1x16xf32> to vector<4x16xf32>
    %182 = vector.broadcast %49 : vector<4x1xf32> to vector<4x16xf32>
    %183 = arith.addf %181, %182 : vector<4x16xf32>
    %cst_75 = arith.constant 0.000000e+00 : f32
    %184 = vector.broadcast %cst_75 : f32 to vector<4x16xf32>
    %185 = arith.mulf %183, %184 : vector<4x16xf32>
    %186 = vector.shape_cast %185 : vector<4x16xf32> to vector<4x1x16xf32>
    %c0_76 = arith.constant 0 : index
    %c0_77 = arith.constant 0 : index
    %c13 = arith.constant 13 : index
    %c0_78 = arith.constant 0 : index
    %187 = vector.load %arg7[%c0_76, %c0_77, %c13, %c0_78] : memref<1x4x16x16xf32, #tpu.memory_space<vmem>>, vector<1x4x1x16xf32>
    %188 = vector.shape_cast %187 : vector<1x4x1x16xf32> to vector<4x1x16xf32>
    %189 = vector.shape_cast %186 : vector<4x1x16xf32> to vector<1x4x1x16xf32>
    tpu.vector_store %arg7[%c0_76, %c0_77, %c13, %c0_78], %189 {strides = array<i32>} : memref<1x4x16x16xf32, #tpu.memory_space<vmem>>, vector<1x4x1x16xf32>,
    %190 = vector.extract_strided_slice %42 {offsets = [0, 252], sizes = [1, 16], strides = [1, 1]} : vector<1x384xf32> to vector<1x16xf32>
    %191 = vector.broadcast %190 : vector<1x16xf32> to vector<4x16xf32>
    %192 = vector.broadcast %49 : vector<4x1xf32> to vector<4x16xf32>
    %193 = arith.addf %191, %192 : vector<4x16xf32>
    %cst_79 = arith.constant 0.000000e+00 : f32
    %194 = vector.broadcast %cst_79 : f32 to vector<4x16xf32>
    %195 = arith.mulf %193, %194 : vector<4x16xf32>
    %196 = vector.shape_cast %195 : vector<4x16xf32> to vector<4x1x16xf32>
    %c0_80 = arith.constant 0 : index
    %c0_81 = arith.constant 0 : index
    %c14 = arith.constant 14 : index
    %c0_82 = arith.constant 0 : index
    %197 = vector.load %arg7[%c0_80, %c0_81, %c14, %c0_82] : memref<1x4x16x16xf32, #tpu.memory_space<vmem>>, vector<1x4x1x16xf32>
    %198 = vector.shape_cast %197 : vector<1x4x1x16xf32> to vector<4x1x16xf32>
    %199 = vector.shape_cast %196 : vector<4x1x16xf32> to vector<1x4x1x16xf32>
    tpu.vector_store %arg7[%c0_80, %c0_81, %c14, %c0_82], %199 {strides = array<i32>} : memref<1x4x16x16xf32, #tpu.memory_space<vmem>>, vector<1x4x1x16xf32>,
    %200 = vector.extract_strided_slice %42 {offsets = [0, 270], sizes = [1, 16], strides = [1, 1]} : vector<1x384xf32> to vector<1x16xf32>
    %201 = vector.broadcast %200 : vector<1x16xf32> to vector<4x16xf32>
    %202 = vector.broadcast %49 : vector<4x1xf32> to vector<4x16xf32>
    %203 = arith.addf %201, %202 : vector<4x16xf32>
    %cst_83 = arith.constant 0.000000e+00 : f32
    %204 = vector.broadcast %cst_83 : f32 to vector<4x16xf32>
    %205 = arith.mulf %203, %204 : vector<4x16xf32>
    %206 = vector.shape_cast %205 : vector<4x16xf32> to vector<4x1x16xf32>
    %c0_84 = arith.constant 0 : index
    %c0_85 = arith.constant 0 : index
    %c15 = arith.constant 15 : index
    %c0_86 = arith.constant 0 : index
    %207 = vector.load %arg7[%c0_84, %c0_85, %c15, %c0_86] : memref<1x4x16x16xf32, #tpu.memory_space<vmem>>, vector<1x4x1x16xf32>
    %208 = vector.shape_cast %207 : vector<1x4x1x16xf32> to vector<4x1x16xf32>
    %209 = vector.shape_cast %206 : vector<4x1x16xf32> to vector<1x4x1x16xf32>
    tpu.vector_store %arg7[%c0_84, %c0_85, %c15, %c0_86], %209 {strides = array<i32>} : memref<1x4x16x16xf32, #tpu.memory_space<vmem>>, vector<1x4x1x16xf32>,
    return
  }
  func.func @transform_0(%arg0: i32) -> (i32, i32, i32) {
    %c0_i32 = arith.constant 0 : i32
    %c0_i32_0 = arith.constant 0 : i32
    %c0_i32_1 = arith.constant 0 : i32
    return %arg0, %c0_i32, %c0_i32_0 : i32, i32, i32
  }
  func.func @transform_1(%arg0: i32) -> (i32, i32) {
    %c0_i32 = arith.constant 0 : i32
    %c0_i32_0 = arith.constant 0 : i32
    %c0_i32_1 = arith.constant 0 : i32
    return %c0_i32, %c0_i32_0 : i32, i32
  }
  func.func @transform_2(%arg0: i32) -> (i32, i32) {
    %c0_i32 = arith.constant 0 : i32
    %c0_i32_0 = arith.constant 0 : i32
    %c0_i32_1 = arith.constant 0 : i32
    return %c0_i32, %c0_i32_0 : i32, i32
  }
  func.func @transform_3(%arg0: i32) -> (i32, i32) {
    %c0_i32 = arith.constant 0 : i32
    %c0_i32_0 = arith.constant 0 : i32
    %c0_i32_1 = arith.constant 0 : i32
    return %c0_i32, %c0_i32_0 : i32, i32
  }
  func.func @transform_4(%arg0: i32) -> (i32, i32) {
    %c0_i32 = arith.constant 0 : i32
    %c0_i32_0 = arith.constant 0 : i32
    %c0_i32_1 = arith.constant 0 : i32
    return %c0_i32, %c0_i32_0 : i32, i32
  }
  func.func @transform_5(%arg0: i32) -> (i32, i32) {
    %c0_i32 = arith.constant 0 : i32
    %c0_i32_0 = arith.constant 0 : i32
    %c0_i32_1 = arith.constant 0 : i32
    return %c0_i32, %c0_i32_0 : i32, i32
  }
  func.func @transform_6(%arg0: i32) -> (i32, i32, i32, i32) {
    %c0_i32 = arith.constant 0 : i32
    %c0_i32_0 = arith.constant 0 : i32
    %c0_i32_1 = arith.constant 0 : i32
    %c0_i32_2 = arith.constant 0 : i32
    return %arg0, %c0_i32, %c0_i32_0, %c0_i32_1 : i32, i32, i32, i32
  }
}

</mosaic_0001>

<bundles_post_ra>
// kernel: _hooked_cnn_forward.1
= control target key start
LH: loop header
LB: loop body
LE: loop exit
PB: predicated region body
PF: predicated region fallthrough
CT: control target
= control target key end

     0   :  { %11 = vsyncpa [#allocation3], 0  ;;  %s2222_s0 = inlined_call_operand.vmem [shape: f32[2,8,384], index: 0, kind: input, shape index: {}]   ;;  %s2223_s1 = inlined_call_operand.vmem [shape: f32[8,72], index: 1, kind: input, shape index: {}]   ;;  %s2224_s2 = inlined_call_operand.vmem [shape: f32[8,1], index: 2, kind: input, shape index: {}]   ;;  %s2225_s3 = inlined_call_operand.vmem [shape: f32[4,72], index: 3, kind: input, shape index: {}]   ;;  %s2226_s4 = inlined_call_operand.vmem [shape: f32[4,1], index: 4, kind: input, shape index: {}]   ;;  %s2227_s5 = inlined_call_operand.vmem [shape: f32[8,384], index: 5, kind: input, shape index: {}]   ;;  %s2228_s6 = inlined_call_operand.hbm [shape: f32[2,4,16,16], index: 6, kind: output, shape index: {}]  }
   0x1   :  { %13 = vsyncpa [#allocation3 + $0x1], 0  ;;  %s1544_s21 = smov 0   ;;  %s1546_s22 = smov 0  }
   0x2   :  { %s1548_s23 = smov 0   ;;  %s1550_s24 = smov 0  }
   0x3 LB: > { %s1565_s25 = sadd.s32 4294967295, %s1473_s24   ;;  %s1228_s26 = sadd.s32 4294967294, %s1473_s24   ;;  %s1473_s24 = sphi %s1550_s24, %s2242_s24   ;;  %s1469_s23 = sphi %s1548_s23, %s2241_s23   ;;  %s1465_s22 = sphi %s1546_s22, %s2240_s22   ;;  %s1461_s21 = sphi %s1544_s21, %s2239_s21  }
   0x4   : > { %s1569_s27 = sadd.s32 1, %s1473_s24   ;;  %s157_s28 = sadd.s32 1, %s1469_s23 }
   0x5   : > { %s154_s29 = ssub.s32 %s1473_s24, %s1569_s27  ;;  %p167_p0 = scmp.ne.s32.totalorder %s1469_s23, %s1465_s22 }
   0x6   : > { %p155_p1 = scmp.eq.s32.totalorder %s154_s29, 0  ;;  %p168_p2 = scmp.eq.s32.totalorder %s1565_s25, 1 }
   0x7   : > { %p173_p3 = scmp.ne.s32.totalorder %s1465_s22, %s1461_s21  ;;  %p174_p4 = scmp.eq.s32.totalorder %s1228_s26, 1 }
   0x8   : > { %s1580_s30 = scalar_select %p155_p1, %s1469_s23, %s157_s28  }
   0x9   : > { %p1582_p5 = por %p168_p2, %p167_p0  ;;  %p1586_p6 = por %p174_p4, %p173_p3 }
   0xa   : > { %p1231_p7 = scmp.ge.s32.totalorder %s1473_s24, 1  ;;  %p215_p8 = scmp.lt.s32.totalorder %s1473_s24, 3 }
   0xc   : > { %p216_p9 = pnand %p1231_p7, %p215_p8 }
   0xd   : > { %p245_p10 = scmp.lt.s32.totalorder (!%p216_p9), %s1565_s25, 1  ;;  %v1475_v0 = vmov (!%p216_p9), 0.0|0.0   ;;  %s1476_s14 = smov (!%p216_p9), 126   ;;  %v1481_v5 = vmov (!%p216_p9), 0.0   ;;  %vm1484_vm0 = vmmov (!%p216_p9), 0   ;;  %v1485_v6 = vmov (!%p216_p9), 0  }
   0xe   : > { %219 = sbr.rel (%p216_p9) target bundleno = 869 (0x365), region = 44  ;;  %1289 = vmatprep.subr.bf16.mxu1 (!%p216_p9), %v1475_v0  ;;  %s1477_s15 = smov (!%p216_p9), 127   ;;  %410 = vmatprep.mubr.f32.mxu0 (!%p216_p9), %v1481_v5  ;;  %v336_v7 = vld [vmem:[%s2224_s2] sm:$0xff] (!%p216_p9)  ;;  %vm622_vm1 = vcmask (!%p216_p9), 584704   ;;  %v259_v10 = vlaneseq (!%p216_p9)  ;;  %vm342_vm10 = vcmask (!%p216_p9), 588800  }
   0xf   : > { %s1478_s16 = smov (!%p216_p9), 110   ;;  %s1479_s17 = smov (!%p216_p9), 108   ;;  %1270 = vmatprep.mubr.msk.f32.mxu1 (!%p216_p9), %vm1484_vm0, %v1481_v5  ;;  %1409 = vset.pattern.permute.xlu1 (!%p216_p9), %v1485_v6  ;;  %v621_v8 = vld [vmem:[%s2225_s3] sm:$0xf] (!%p216_p9) }
  0x10   : > { %s1480_s18 = smov (!%p216_p9), 109   ;;  %s1482_s19 = smov (!%p216_p9), 91   ;;  %1410 = vset.pattern.permute.xlu0 (!%p216_p9), %v1485_v6  ;;  %v623_v9 = vsel (!%p216_p9), %vm622_vm1, %v621_v8, 0.0  ;;  %v1619_v11 = vand.u32 (!%p216_p9), 127, %v259_v10 }
  0x11   : > { %s1483_s20 = smov (!%p216_p9), 92   ;;  %s1486_s26 = smov (!%p216_p9), 90  }
  0x12   : > { %vm261_vm2 = vcmp.lt.s32.totalorder (!%p216_p9), %v1619_v11, 127  ;;  %vm281_vm3 = vcmp.lt.s32.totalorder (!%p216_p9), %v1619_v11, 110  ;;  %vm271_vm4 = vcmp.lt.s32.totalorder (!%p216_p9), %v1619_v11, 126  ;;  %vm301_vm5 = vcmp.lt.s32.totalorder (!%p216_p9), %v1619_v11, 108  ;;  %s1488_s28 = smov (!%p216_p9), 19   ;;  %s1490_s11 = smov (!%p216_p9), 17  }
  0x13   : > { %vm291_vm6 = vcmp.lt.s32.totalorder (!%p216_p9), %v1619_v11, 109  ;;  %vm321_vm7 = vcmp.lt.s32.totalorder (!%p216_p9), %v1619_v11, 91  ;;  %vm311_vm8 = vcmp.lt.s32.totalorder (!%p216_p9), %v1619_v11, 92  ;;  %vm331_vm9 = vcmp.lt.s32.totalorder (!%p216_p9), %v1619_v11, 90  ;;  %s1496_s29 = smov (!%p216_p9), 20   ;;  %s1500_s12 = smov (!%p216_p9), 2  }
  0x14   : > { %vm518_vm14 = vcmp.lt.s32.totalorder (!%p216_p9), %v1619_v11, 18  ;;  %vm505_vm15 = vcmp.lt.s32.totalorder (!%p216_p9), %v1619_v11, 19  ;;  %vm531_vm0 = vcmp.lt.s32.totalorder (!%p216_p9), %v1619_v11, 17  ;;  %vm544_vm1 = vcmp.lt.s32.totalorder (!%p216_p9), %v1619_v11, 1 }
  0x15   : > { %s246_s9 = scalar_select %p245_p10, %s1565_s25, 1 }
  0x17   : > { %s1301_s10 = smul.u32 24, %s246_s9  ;;  %s2230_s9 = smov 112  }
  0x19   : > { %s249_s13 = scalar_lea.vmem %s2222_s0, %s1301_s10  ;;  %s1489_s10 = smov 18  }
  0x1a   : > { %v251_v1 = vld [vmem:[%s249_s13 + $0x8] sm:$0xff]  ;;  %v1598_v2 = vld [vmem:[%s249_s13 + $0x10] sm:$0xff]  ;;  %v250_v4 = vld [vmem:[%s249_s13] sm:$0xff]  ;;  %s1501_s13 = smov 58  }
  0x1b   : > { %v1379_v3 = vpack.i.bf16 %v1598_v2, %v251_v1 }
  0x1d   : > { %1380 = vrot.lane.b32.xlu1 %v1379_v3, %s1476_s14  ;;  %1375 = vrot.lane.b32.xlu0 %v1379_v3, %s1477_s15 }
  0x21   : > { %1385 = vrot.lane.b32.xlu1 %v1379_v3, %s1478_s16  ;;  %253 = vrot.lane.b32.xlu0 %v250_v4, %s1477_s15 }
  0x25   : > { %275 = vrot.lane.b32.xlu1 %v250_v4, %s1478_s16  ;;  %265 = vrot.lane.b32.xlu0 %v250_v4, %s1476_s14  ;;  %s1491_s14 = smov 1  }
  0x29   : > { %1395 = vrot.lane.b32.xlu1 %v1379_v3, %s1479_s17  ;;  %1390 = vrot.lane.b32.xlu0 %v1379_v3, %s1480_s18 }
  0x2d   : > { %295 = vrot.lane.b32.xlu1 %v250_v4, %s1479_s17  ;;  %285 = vrot.lane.b32.xlu0 %v250_v4, %s1480_s18 }
  0x31   : > { %1405 = vrot.lane.b32.xlu1 %v1379_v3, %s1482_s19  ;;  %1400 = vrot.lane.b32.xlu0 %v1379_v3, %s1483_s20 }
  0x35   : > { %315 = vrot.lane.b32.xlu1 %v250_v4, %s1482_s19  ;;  %305 = vrot.lane.b32.xlu0 %v250_v4, %s1483_s20  ;;  %s1493_s19 = smov 74  }
  0x39   : > { %329 = vrot.lane.b32.xlu1 %v1598_v2, %s1486_s26  ;;  %327 = vrot.lane.b32.xlu0 %v251_v1, %s1486_s26 }
  0x3d   : > { %325 = vrot.lane.b32.xlu0 %v250_v4, %s1486_s26  ;;  %339 = vperm.xlu1 %1409, %v336_v7   ;;  %s1487_s26 = smov 111  }
  0x61   : > { %624 = vadd.xlane.f32.xlu1 %v623_v9 }
  0x8f   : > { %v1381_v12 = vpop.permute.xlu1 %1380  ;;  %v1376_v13 = vpop.permute.xlu0 %1375 }
  0x90   : > { %v1378_v14 = vunpack.i.h.bf16 %v1376_v13  ;;  %v1377_v15 = vunpack.i.l.bf16 %v1376_v13  ;;  %v1383_v16 = vunpack.i.h.bf16 %v1381_v12  ;;  %v1382_v17 = vunpack.i.l.bf16 %v1381_v12 }
  0x92   : > { %v262_v18 = vsel %vm261_vm2, %v1377_v15, %v1378_v14  ;;  %v272_v28 = vsel %vm271_vm4, %v1382_v17, %v1383_v16 }
  0x93   : > { %v1386_v19 = vpop.permute.xlu1 %1385  ;;  %v254_v20 = vpop.permute.xlu0 %253  ;;  %v1273_v21 = vpack.c.bf16 %v262_v18, %v251_v1 }
  0x94   : > { %v1388_v22 = vunpack.i.h.bf16 %v1386_v19  ;;  %v1387_v23 = vunpack.i.l.bf16 %v1386_v19  ;;  %v263_v24 = vsel %vm261_vm2, %v254_v20, %v1377_v15  ;;  %v264_v25 = vsel %vm261_vm2, %v1378_v14, %v254_v20  ;;  %v626_v20 = vld [vmem:[%s2226_s4] sm:$0xf] }
  0x95   : > { %1274 = vmatprep.subr.bf16.mxu0 %v1273_v21  ;;  %v1275_v26 = vpack.c.bf16 %v263_v24, %v250_v4  ;;  %v1290_v27 = vpack.c.bf16 %v264_v25, %v1598_v2 }
  0x96   : > { %v282_v29 = vsel %vm281_vm3, %v1387_v23, %v1388_v22 }
  0x97   : > { %v276_v30 = vpop.permute.xlu1 %275  ;;  %1276 = vmatpush1.bf16.msra.mxu0 %v1275_v26  ;;  %1291 = vmatpush3.bf16.msra.mxu1 %v1290_v27  ;;  %v266_v31 = vpop.permute.xlu0 %265  ;;  %v1277_v32 = vpack.c.bf16 %v282_v29, %v272_v28 }
  0x98   : > { %v283_v33 = vsel %vm281_vm3, %v276_v30, %v1387_v23  ;;  %v284_v34 = vsel %vm281_vm3, %v1388_v22, %v276_v30  ;;  %v273_v35 = vsel %vm271_vm4, %v266_v31, %v1382_v17  ;;  %v274_v36 = vsel %vm271_vm4, %v1383_v16, %v266_v31  ;;  %1292 = vmatprep.subr.bf16.mxu1 %v1475_v0  ;;  %v335_v16 = vld [vmem:[%s2223_s1] sm:$0xff]  ;;  %v492_v23 = vld [vmem:[%s2227_s5 + $0x10] sm:$0xff] }
  0x99   : > { %1278 = vmatprep.subr.bf16.mxu0 %v1277_v32  ;;  %v1279_v37 = vpack.c.bf16 %v283_v33, %v273_v35  ;;  %v1293_v38 = vpack.c.bf16 %v284_v34, %v274_v36  ;;  %vm495_vm11 = vcmp.gt.f32.partialorder %v492_v23, 0.0  ;;  %v490_v32 = vld [vmem:[%s2227_s5] sm:$0xff]  ;;  %v491_v36 = vld [vmem:[%s2227_s5 + $0x8] sm:$0xff]  ;;  %vm572_vm4 = vcmp.lt.s32.totalorder %v1619_v11, 111 }
  0x9a   : > { %vm493_vm12 = vcmp.gt.f32.partialorder %v490_v32, 0.0  ;;  %vm494_vm13 = vcmp.gt.f32.partialorder %v491_v36, 0.0 }
  0x9b   : > { %v1396_v39 = vpop.permute.xlu1 %1395  ;;  %1280 = vmatpush1.bf16.msra.mxu0 %v1279_v37  ;;  %1294 = vmatpush3.bf16.msra.mxu1 %v1293_v38  ;;  %v1391_v40 = vpop.permute.xlu0 %1390 }
  0x9c   : > { %v1398_v41 = vunpack.i.h.bf16 %v1396_v39  ;;  %v1397_v42 = vunpack.i.l.bf16 %v1396_v39  ;;  %v1393_v43 = vunpack.i.h.bf16 %v1391_v40  ;;  %v1392_v44 = vunpack.i.l.bf16 %v1391_v40  ;;  %1295 = vmatprep.subr.bf16.mxu1 %v1475_v0 }
  0x9e   : > { %v292_v45 = vsel %vm291_vm6, %v1392_v44, %v1393_v43  ;;  %v302_v46 = vsel %vm301_vm5, %v1397_v42, %v1398_v41 }
  0x9f   : > { %v296_v47 = vpop.permute.xlu1 %295  ;;  %v286_v48 = vpop.permute.xlu0 %285  ;;  %v1281_v49 = vpack.c.bf16 %v302_v46, %v292_v45 }
  0xa0   : > { %v303_v50 = vsel %vm301_vm5, %v296_v47, %v1397_v42  ;;  %v304_v51 = vsel %vm301_vm5, %v1398_v41, %v296_v47  ;;  %v293_v52 = vsel %vm291_vm6, %v286_v48, %v1392_v44  ;;  %v294_v53 = vsel %vm291_vm6, %v1393_v43, %v286_v48 }
  0xa1   : > { %1282 = vmatprep.subr.bf16.mxu0 %v1281_v49  ;;  %v1283_v54 = vpack.c.bf16 %v303_v50, %v293_v52  ;;  %v1296_v55 = vpack.c.bf16 %v304_v51, %v294_v53  ;;  %vm1083_vm5 = vcmask 31744  }
  0xa3   : > { %v1406_v56 = vpop.permute.xlu1 %1405  ;;  %v1401_v57 = vpop.permute.xlu0 %1400  ;;  %1284 = vmatpush1.bf16.msra.mxu0 %v1283_v54  ;;  %1297 = vmatpush3.bf16.msra.mxu1 %v1296_v55 }
  0xa4   : > { %v1408_v58 = vunpack.i.h.bf16 %v1406_v56  ;;  %v1407_v59 = vunpack.i.l.bf16 %v1406_v56  ;;  %v1403_v60 = vunpack.i.h.bf16 %v1401_v57  ;;  %v1402_v61 = vunpack.i.l.bf16 %v1401_v57  ;;  %1298 = vmatprep.subr.bf16.mxu1 %v1475_v0 }
  0xa6   : > { %v312_v62 = vsel %vm311_vm8, %v1402_v61, %v1403_v60  ;;  %v322_v63 = vsel %vm321_vm7, %v1407_v59, %v1408_v58 }
  0xa7   : > { %v316_v1 = vpop.permute.xlu1 %315  ;;  %v306_v2 = vpop.permute.xlu0 %305  ;;  %v1285_v3 = vpack.c.bf16 %v322_v63, %v312_v62 }
  0xa8   : > { %v323_v4 = vsel %vm321_vm7, %v316_v1, %v1407_v59  ;;  %v324_v6 = vsel %vm321_vm7, %v1408_v58, %v316_v1  ;;  %v313_v7 = vsel %vm311_vm8, %v306_v2, %v1402_v61  ;;  %v314_v8 = vsel %vm311_vm8, %v1403_v60, %v306_v2 }
  0xa9   : > { %1286 = vmatprep.subr.bf16.mxu0 %v1285_v3  ;;  %v1287_v9 = vpack.c.bf16 %v323_v4, %v313_v7  ;;  %v1299_v12 = vpack.c.bf16 %v324_v6, %v314_v8 }
  0xab   : > { %v330_v13 = vpop.permute.xlu1 %329  ;;  %v328_v14 = vpop.permute.xlu0 %327  ;;  %1288 = vmatpush1.bf16.msra.mxu0 %v1287_v9  ;;  %1300 = vmatpush3.bf16.msra.mxu1 %v1299_v12 }
  0xac   : > { %v332_v15 = vsel %vm331_vm9, %v328_v14, %v330_v13  ;;  %1268 = vmatprep.subr.mxu1 %v1481_v5 }
  0xad   : > { %362 = vmatprep.subr.mxu0 %v332_v15 }
  0xaf   : > { %v326_v0 = vpop.permute.xlu0 %325 }
  0xb0   : > { %v333_v17 = vsel %vm331_vm9, %v326_v0, %v328_v14  ;;  %v334_v18 = vsel %vm331_vm9, %v330_v13, %v326_v0 }
  0xb1   : > { %363 = vmatpush1.msra.mxu0 %v333_v17  ;;  %1269 = vmatpush3.msra.mxu1 %v334_v18 }
  0xb2   : > { %1234 = vmatmul.mubr.msk.f32.vlgmr.msra.gmra.mrb[0].mxu0 %vm342_vm10, %v335_v16  ;;  %1271 = vmatmul.mubr.msk.f32.vlgmr.msra.gmra.mrb[0].mxu1 %vm342_vm10, %v335_v16 }
  0xbc   : > { %v340_v19 = vpop.permute.xlu1 %339 }
  0xee   : > { %v625_v21 = vpop.xlane.xlu1 %624 }
  0xef   : > { %v627_v5 = vadd.f32 %v626_v20, %v625_v21 }
  0xf1   : > { %v628_v22 = vmul.f32 0.0, %v627_v5 }
  0xf3   : > { %631 = vperm.xlu0 %1410, %v628_v22  }
 0x172   : > { %v1715_v39 = vpop.permute.xlu0 %631 }
 0x185   : > { %v412_v24 = vpop.f32.mrb[0].mxu0  ;;  %v483_v25 = vpop.f32.mrb[0].mxu1 }
 0x186   : > { %v484_v26 = vadd.f32 %v483_v25, %v340_v19  ;;  %v414_v27 = vpop.f32.mrb[1].mxu0  ;;  %v1272_v28 = vpop.f32.mrb[1].mxu1  ;;  %v413_v30 = vadd.f32 %v412_v24, %v340_v19 }
 0x187   : > { %v415_v35 = vadd.f32 %v414_v27, %v340_v19 }
 0x188   : > { %v489_v29 = vmul.f32 0.0, %v484_v26  ;;  %v487_v33 = vmul.f32 0.0, %v413_v30 }
 0x189   : > { %v488_v37 = vmul.f32 0.0, %v415_v35 }
 0x18a   : > { %v1667_v31 = vsel %vm495_vm11, %v489_v29, 0.0  ;;  %v1678_v34 = vsel %vm493_vm12, %v487_v33, 0.0 }
 0x18b   : > { %570 = vrot.lane.b32.xlu1 %v1667_v31, %s1487_s26  ;;  %503 = vrot.lane.b32.xlu0 %v1667_v31, %s1488_s28  ;;  %v1689_v38 = vsel %vm494_vm13, %v488_v37, 0.0 }
 0x18f   : > { %595 = vrot.lane.b32.xlu1 %v1667_v31, %s1480_s18  ;;  %516 = vrot.lane.b32.xlu0 %v1667_v31, %s1489_s10 }
 0x193   : > { %529 = vrot.lane.b32.xlu0 %v1667_v31, %s1490_s11  ;;  %554 = vrot.lane.b32.xlu1 %v1678_v34, %s1477_s15 }
 0x197   : > { %542 = vrot.lane.b32.xlu0 %v1667_v31, %s1491_s14  ;;  %591 = vrot.lane.b32.xlu1 %v1678_v34, %s1480_s18 }
 0x19b   : > { %558 = vrot.lane.b32.xlu0 %v1667_v31, %s1477_s15  ;;  %501 = vrot.lane.b32.xlu1 %v1689_v38, %s1488_s28 }
 0x19f   : > { %583 = vrot.lane.b32.xlu0 %v1667_v31, %s1478_s16  ;;  %581 = vrot.lane.b32.xlu1 %v1689_v38, %s1478_s16 }
 0x1a3   : > { %499 = vrot.lane.b32.xlu0 %v1678_v34, %s1488_s28  ;;  %s1495_s28 = smov 38  }
 0x1a7   : > { %512 = vrot.lane.b32.xlu0 %v1678_v34, %s1489_s10 }
 0x1ab   : > { %525 = vrot.lane.b32.xlu0 %v1678_v34, %s1490_s11 }
 0x1af   : > { %538 = vrot.lane.b32.xlu0 %v1678_v34, %s1491_s14 }
 0x1b3   : > { %566 = vrot.lane.b32.xlu0 %v1678_v34, %s1487_s26 }
 0x1b7   : > { %579 = vrot.lane.b32.xlu0 %v1678_v34, %s1478_s16 }
 0x1bb   : > { %514 = vrot.lane.b32.xlu0 %v1689_v38, %s1489_s10  ;;  %s1498_s10 = smov 94  }
 0x1bf   : > { %527 = vrot.lane.b32.xlu0 %v1689_v38, %s1490_s11  ;;  %s1499_s11 = smov 76  }
 0x1c3   : > { %540 = vrot.lane.b32.xlu0 %v1689_v38, %s1491_s14  ;;  %s1502_s14 = smov 40  }
 0x1c7   : > { %556 = vrot.lane.b32.xlu0 %v1689_v38, %s1477_s15  ;;  %s2229_s15 = sand.u32 1, %s1465_s22  }
 0x1cb   : > { %568 = vrot.lane.b32.xlu0 %v1689_v38, %s1487_s26  ;;  %s1494_s26 = smov 56  }
 0x1cf   : > { %593 = vrot.lane.b32.xlu0 %v1689_v38, %s1480_s18  ;;  %s1232_s18 = sshll.u32 %s2229_s15, 6  ;;  %s2232_s15 = smov 114  }
 0x1d0   : > { %s1783_s17 = scalar_lea.vmem [#allocation2], %s1232_s18  ;;  %s1503_s18 = smov 22  }
 0x1fd   : > { %v504_v40 = vpop.permute.xlu0 %503  ;;  %v571_v47 = vpop.permute.xlu1 %570 }
 0x201   : > { %v517_v41 = vpop.permute.xlu0 %516  ;;  %v1719_v49 = vpop.permute.xlu1 %595 }
 0x205   : > { %v530_v42 = vpop.permute.xlu0 %529  ;;  %v555_v52 = vpop.permute.xlu1 %554 }
 0x209   : > { %v543_v43 = vpop.permute.xlu0 %542  ;;  %v592_v54 = vpop.permute.xlu1 %591 }
 0x20d   : > { %v559_v44 = vpop.permute.xlu0 %558  ;;  %v502_v58 = vpop.permute.xlu1 %501 }
 0x20e   : > { %v506_v62 = vsel %vm505_vm15, %v502_v58, %v504_v40  ;;  %v562_v23 = vsel %vm261_vm2, %v559_v44, %v555_v52 }
 0x211   : > { %v1717_v45 = vpop.permute.xlu0 %583  ;;  %v582_v29 = vpop.permute.xlu1 %581 }
 0x215   : > { %v500_v46 = vpop.permute.xlu0 %499 }
 0x216   : > { %v507_v63 = vsel %vm505_vm15, %v500_v46, %v502_v58  ;;  %v508_v2 = vsel %vm505_vm15, %v504_v40, %v500_v46  ;;  %v1492_v58 = vmov 1966171168  }
 0x219   : > { %v513_v48 = vpop.permute.xlu0 %512 }
 0x21a   : > { %v521_v59 = vsel %vm518_vm14, %v517_v41, %v513_v48 }
 0x21b   : > { %v522_v7 = vadd.f32 %v521_v59, %v508_v2  ;;  %v638_v59 = vunpack.c.l.s4 %v1492_v58 }
 0x21d   : > { %v526_v50 = vpop.permute.xlu0 %525  ;;  %v639_v11 = vunpack.c.0.s8 %v638_v59 }
 0x21e   : > { %v534_v3 = vsel %vm531_vm0, %v530_v42, %v526_v50 }
 0x21f   : > { %v535_v13 = vadd.f32 %v534_v3, %v522_v7 }
 0x221   : > { %v539_v51 = vpop.permute.xlu0 %538 }
 0x222   : > { %v547_v12 = vsel %vm544_vm1, %v543_v43, %v539_v51 }
 0x223   : > { %v548_v18 = vadd.f32 %v547_v12, %v535_v13 }
 0x225   : > { %v567_v53 = vpop.permute.xlu0 %566  ;;  %v551_v27 = vadd.f32 %v548_v18, %v1678_v34  ;;  %v599_v34 = vsel %vm291_vm6, %v1719_v49, %v592_v54 }
 0x226   : > { %v575_v28 = vsel %vm572_vm4, %v571_v47, %v567_v53 }
 0x229   : > { %v580_v55 = vpop.permute.xlu0 %579 }
 0x22a   : > { %v587_v56 = vsel %vm281_vm3, %v1717_v45, %v580_v55 }
 0x22d   : > { %v515_v57 = vpop.permute.xlu0 %514 }
 0x22e   : > { %v519_v60 = vsel %vm518_vm14, %v515_v57, %v517_v41  ;;  %v520_v61 = vsel %vm518_vm14, %v513_v48, %v515_v57  ;;  %v585_v41 = vsel %vm281_vm3, %v582_v29, %v1717_v45 }
 0x22f   : > { %v523_v8 = vadd.f32 %v520_v61, %v507_v63  ;;  %v524_v9 = vadd.f32 %v519_v60, %v506_v62 }
 0x231   : > { %v528_v1 = vpop.permute.xlu0 %527 }
 0x232   : > { %v532_v4 = vsel %vm531_vm0, %v528_v1, %v530_v42  ;;  %v533_v6 = vsel %vm531_vm0, %v526_v50, %v528_v1  ;;  %v586_v42 = vsel %vm281_vm3, %v580_v55, %v582_v29  ;;  %vm858_vm3 = vcmask 15360  }
 0x233   : > { %v536_v14 = vadd.f32 %v533_v6, %v523_v8  ;;  %v537_v15 = vadd.f32 %v532_v4, %v524_v9 }
 0x235   : > { %v541_v0 = vpop.permute.xlu0 %540 }
 0x236   : > { %v545_v16 = vsel %vm544_vm1, %v541_v0, %v543_v43  ;;  %v546_v17 = vsel %vm544_vm1, %v539_v51, %v541_v0 }
 0x237   : > { %v549_v19 = vadd.f32 %v546_v17, %v536_v14  ;;  %v550_v20 = vadd.f32 %v545_v16, %v537_v15 }
 0x239   : > { %v553_v21 = vadd.f32 %v550_v20, %v1667_v31  ;;  %v552_v5 = vadd.f32 %v549_v19, %v1689_v38  ;;  %v557_v22 = vpop.permute.xlu0 %556 }
 0x23a   : > { %v560_v24 = vsel %vm261_vm2, %v557_v22, %v559_v44  ;;  %v561_v25 = vsel %vm261_vm2, %v555_v52, %v557_v22  ;;  %vm665_vm2 = vcmask 122880  }
 0x23b   : > { %v565_v26 = vadd.f32 %v562_v23, %v553_v21  ;;  %v563_v31 = vadd.f32 %v561_v25, %v551_v27  ;;  %v564_v32 = vadd.f32 %v560_v24, %v552_v5 }
 0x23d   : > { %v578_v30 = vadd.f32 %v575_v28, %v565_v26  ;;  %v569_v33 = vpop.permute.xlu0 %568 }
 0x23e   : > { %v573_v35 = vsel %vm572_vm4, %v569_v33, %v571_v47  ;;  %v574_v36 = vsel %vm572_vm4, %v567_v53, %v569_v33 }
 0x23f   : > { %v590_v37 = vadd.f32 %v587_v56, %v578_v30  ;;  %v576_v38 = vadd.f32 %v574_v36, %v563_v31  ;;  %v577_v40 = vadd.f32 %v573_v35, %v564_v32 }
 0x241   : > { %v602_v43 = vadd.f32 %v599_v34, %v590_v37  ;;  %v588_v44 = vadd.f32 %v586_v42, %v576_v38  ;;  %v589_v46 = vadd.f32 %v585_v41, %v577_v40  ;;  %v594_v47 = vpop.permute.xlu0 %593 }
 0x242   : > { %v597_v48 = vsel %vm291_vm6, %v594_v47, %v1719_v49  ;;  %v598_v50 = vsel %vm291_vm6, %v592_v54, %v594_v47  ;;  %v641_v49 = vshrl.u32 %v259_v10, 7 }
 0x243   : > { %v615_v51 = vrot.slane %v602_v43, 4  ;;  %v600_v52 = vadd.f32 %v598_v50, %v588_v44  ;;  %v601_v53 = vadd.f32 %v597_v48, %v589_v46 }
 0x244   : > { %v1758_v8 = vsub.s32 %v639_v11, %v641_v49  ;;  %v1767_v18 = vsub.s32 0, %v641_v49  ;;  %v1777_v28 = vsub.s32 1, %v641_v49 }
 0x245   : > { %v616_v56 = vadd.f32 %v615_v51, %v602_v43  ;;  %v603_v57 = vrot.slane %v600_v52, 4  ;;  %v609_v45 = vrot.slane %v601_v53, 4 }
 0x247   : > { %v604_v55 = vadd.f32 %v603_v57, %v600_v52  ;;  %v610_v60 = vadd.f32 %v609_v45, %v601_v53  ;;  %v617_v61 = vrot.slane %v616_v56, 2 }
 0x249   : > { %v605_v62 = vrot.slane %v604_v55, 2  ;;  %v611_v63 = vrot.slane %v610_v60, 2  ;;  %v618_v1 = vadd.f32 %v617_v61, %v616_v56 }
 0x24b   : > { %v606_v54 = vadd.f32 %v605_v62, %v604_v55  ;;  %v612_v2 = vadd.f32 %v611_v63, %v610_v60  ;;  %v619_v3 = vrot.slane %v618_v1, 1 }
 0x24d   : > { %v607_v4 = vrot.slane %v606_v54, 1  ;;  %v613_v6 = vrot.slane %v612_v2, 1  ;;  %v620_v7 = vadd.f32 %v619_v3, %v618_v1 }
 0x24f   : > { %v608_v9 = vadd.f32 %v607_v4, %v606_v54  ;;  %v614_v12 = vadd.f32 %v613_v6, %v612_v2  ;;  %v1007_v13 = vadd.f32 %v1715_v39, %v620_v7 }
 0x251   : > { %v634_v14 = vadd.f32 %v1715_v39, %v608_v9  ;;  %v782_v15 = vadd.f32 %v1715_v39, %v614_v12  ;;  %v1008_v10 = vmul.f32 0.0, %v1007_v13 }
 0x253   : > { %v635_v0 = vmul.f32 0.0, %v634_v14  ;;  %v783_v16 = vmul.f32 0.0, %v782_v15  ;;  %v1102_v17 = vrot.slane %v1008_v10, %v1758_v8 }
 0x255   : > { %v643_v19 = vrot.slane %v635_v0, %v1758_v8  ;;  %v877_v20 = vrot.slane %v783_v16, %v1758_v8  ;;  %v785_v21 = vcombine.low %v635_v0, %v783_v16  ;;  %v1010_v5 = vcombine.low %v783_v16, %v1008_v10 }
 0x256   : > { %v1772_v22 = vrot.slane %v1102_v17, %v1758_v8  ;;  %v1103_v39 = vcombine.high %v1102_v17, %v1102_v17 }
 0x257   : > { %v644_v23 = vcombine.high %v643_v19, %v643_v19  ;;  %v651_v24 = vrot.slane %v643_v19, %v1758_v8  ;;  %v878_v25 = vcombine.high %v877_v20, %v877_v20  ;;  %v885_v26 = vrot.slane %v877_v20, %v1758_v8 }
 0x258   : > { %v792_v27 = vrot.slane %v785_v21, %v1758_v8  ;;  %v1123_v29 = vrot.slane %v1772_v22, %v1767_v18  ;;  %v1017_v30 = vrot.slane %v1010_v5, %v1758_v8  ;;  %v1801_v40 = vrot.slane %v1103_v39, %v1758_v8 }
 0x259   : > { %v658_v31 = vrot.slane %v644_v23, %v1758_v8  ;;  %666 = vst.msk [vmem:[%s1783_s17] sm:$0x1] %vm665_vm2, %v651_v24  ;;  %v673_v32 = vrot.slane %v651_v24, %v1767_v18  ;;  %v1789_v33 = vrot.slane %v885_v26, %v1767_v18  ;;  %v892_v35 = vrot.slane %v878_v25, %v1758_v8 }
 0x25a   : > { %v1793_v36 = vrot.slane %v792_v27, %v1758_v8  ;;  %v1796_v37 = vrot.slane %v1017_v30, %v1758_v8  ;;  %v1798_v38 = vcombine.high %v651_v24, %v651_v24  ;;  %v1118_v41 = vcombine.high %v1772_v22, %v1772_v22 }
 0x25b   : > { %667 = vst.msk [vmem:[%s1783_s17 + $0x10] sm:$0x1] %vm665_vm2, %v658_v31  ;;  %702 = vrot.lane.b32.xlu0 %v673_v32, %s1483_s20  ;;  %686 = vrot.lane.b32.xlu1 %v673_v32, %s1478_s16  ;;  %v1808_v34 = vrot.slane %v892_v35, %v1767_v18  ;;  %v660_v42 = vcombine.high %v658_v31, %v658_v31 }
 0x25c   : > { %v677_v43 = vrot.slane %v658_v31, %v1767_v18  ;;  %v817_v44 = vrot.slane %v1793_v36, %v1777_v28  ;;  %v1038_v46 = vrot.slane %v1796_v37, %v1767_v18  ;;  %668 = vst.msk [vmem:[%s1783_s17 + $0x20] sm:$0x1] %vm665_vm2, %v1798_v38  ;;  %v1119_v47 = vcombine.high %v1801_v40, %v1801_v40 }
 0x25d   : > { %v1127_v48 = vrot.slane %v1801_v40, %v1767_v18  ;;  %v1825_v50 = vrot.slane %v660_v42, %v1767_v18  ;;  %669 = vst.msk [vmem:[%s1783_s17 + $0x30] sm:$0x1] %vm665_vm2, %v660_v42  ;;  %v813_v51 = vrot.slane %v1793_v36, %v1767_v18  ;;  %v893_v52 = vcombine.high %v885_v26, %v885_v26 }
 0x25e   : > { %v1042_v53 = vrot.slane %v1796_v37, %v1777_v28  ;;  %v793_v56 = vcombine.high %v792_v27, %v792_v27  ;;  %v1835_v57 = vcombine.high %v1793_v36, %v1793_v36  ;;  %v894_v45 = vcombine.high %v892_v35, %v892_v35 }
 0x25f   : > { %718 = vrot.lane.b32.xlu0 %v673_v32, %s1493_s19  ;;  %688 = vrot.lane.b32.xlu1 %v677_v43, %s1478_s16  ;;  %v1840_v58 = vrot.slane %v893_v52, %v1767_v18  ;;  %v1018_v59 = vcombine.high %v1017_v30, %v1017_v30  ;;  %v1844_v55 = vcombine.high %v1796_v37, %v1796_v37 }
 0x260   : > { %v1847_v60 = vrot.slane %v793_v56, %v1758_v8  ;;  %v833_v61 = vrot.slane %v1835_v57, %v1777_v28  ;;  %v1852_v62 = vrot.slane %v894_v45, %v1767_v18  ;;  %v829_v63 = vrot.slane %v1835_v57, %v1767_v18 }
 0x261   : > { %v1857_v1 = vrot.slane %v1018_v59, %v1758_v8  ;;  %v1054_v49 = vrot.slane %v1844_v55, %v1767_v18  ;;  %v1058_v11 = vrot.slane %v1844_v55, %v1777_v28  ;;  %v1864_v54 = vrot.slane %v1118_v41, %v1767_v18 }
 0x262   : > { %v825_v2 = vrot.slane %v1847_v60, %v1777_v28  ;;  %v821_v3 = vrot.slane %v1847_v60, %v1767_v18  ;;  %v1872_v4 = vcombine.high %v1847_v60, %v1847_v60  ;;  %v1875_v6 = vrot.slane %v1119_v47, %v1767_v18 }
 0x263   : > { %734 = vrot.lane.b32.xlu0 %v673_v32, %s1494_s26  ;;  %704 = vrot.lane.b32.xlu1 %v677_v43, %s1483_s20  ;;  %v1046_v7 = vrot.slane %v1857_v1, %v1767_v18  ;;  %v1050_v8 = vrot.slane %v1857_v1, %v1777_v28  ;;  %v1885_v9 = vcombine.high %v1857_v1, %v1857_v1 }
 0x264   : > { %v837_v12 = vrot.slane %v1872_v4, %v1767_v18  ;;  %v841_v13 = vrot.slane %v1872_v4, %v1777_v28  ;;  %v681_v10 = vrot.slane %v1798_v38, %v1767_v18 }
 0x265   : > { %v1066_v14 = vrot.slane %v1885_v9, %v1777_v28  ;;  %v1062_v15 = vrot.slane %v1885_v9, %v1767_v18 }
 0x267   : > { %750 = vrot.lane.b32.xlu0 %v673_v32, %s1495_s28  ;;  %720 = vrot.lane.b32.xlu1 %v677_v43, %s1493_s19 }
 0x26b   : > { %766 = vrot.lane.b32.xlu0 %v673_v32, %s1496_s29  ;;  %736 = vrot.lane.b32.xlu1 %v677_v43, %s1494_s26 }
 0x26f   : > { %752 = vrot.lane.b32.xlu1 %v677_v43, %s1495_s28  ;;  %911 = vrot.lane.b32.xlu0 %v1789_v33, %s2230_s9 }
 0x273   : > { %768 = vrot.lane.b32.xlu1 %v677_v43, %s1496_s29  ;;  %927 = vrot.lane.b32.xlu0 %v1789_v33, %s1498_s10 }
 0x277   : > { %943 = vrot.lane.b32.xlu0 %v1789_v33, %s1499_s11  ;;  %844 = vrot.lane.b32.xlu1 %v817_v44, %s1500_s12 }
 0x27b   : > { %959 = vrot.lane.b32.xlu0 %v1789_v33, %s1501_s13  ;;  %913 = vrot.lane.b32.xlu1 %v1808_v34, %s2230_s9  ;;  %s1505_s9 = smov 4  }
 0x27f   : > { %975 = vrot.lane.b32.xlu0 %v1789_v33, %s1502_s14  ;;  %929 = vrot.lane.b32.xlu1 %v1808_v34, %s1498_s10 }
 0x283   : > { %991 = vrot.lane.b32.xlu0 %v1789_v33, %s1503_s18  ;;  %945 = vrot.lane.b32.xlu1 %v1808_v34, %s1499_s11 }
 0x287   : > { %1136 = vrot.lane.b32.xlu0 %v1123_v29, %s2232_s15  ;;  %1067 = vrot.lane.b32.xlu1 %v1038_v46, %s1505_s9 }
 0x28b   : > { %690 = vrot.lane.b32.xlu0 %v681_v10, %s1478_s16  ;;  %961 = vrot.lane.b32.xlu1 %v1808_v34, %s1501_s13 }
 0x28f   : > { %706 = vrot.lane.b32.xlu0 %v681_v10, %s1483_s20  ;;  %977 = vrot.lane.b32.xlu1 %v1808_v34, %s1502_s14 }
 0x293   : > { %722 = vrot.lane.b32.xlu0 %v681_v10, %s1493_s19  ;;  %993 = vrot.lane.b32.xlu1 %v1808_v34, %s1503_s18 }
 0x297   : > { %738 = vrot.lane.b32.xlu0 %v681_v10, %s1494_s26  ;;  %1138 = vrot.lane.b32.xlu1 %v1127_v48, %s2232_s15  ;;  %s2236_s15 = smov 112  }
 0x29b   : > { %754 = vrot.lane.b32.xlu0 %v681_v10, %s1495_s28  ;;  %692 = vrot.lane.b32.xlu1 %v1825_v50, %s1478_s16  ;;  %s2237_s16 = smov 114  }
 0x29f   : > { %770 = vrot.lane.b32.xlu0 %v681_v10, %s1496_s29  ;;  %708 = vrot.lane.b32.xlu1 %v1825_v50, %s1483_s20  ;;  %s1241_s20 = sshll.u32 %s1565_s25, 10  ;;  %s2238_s25 = sand.u32 1, %s1465_s22  }
 0x2a3   : > { %724 = vrot.lane.b32.xlu1 %v1825_v50, %s1493_s19  ;;  %842 = vrot.lane.b32.xlu0 %v813_v51, %s1500_s12 }
 0x2a7   : > { %740 = vrot.lane.b32.xlu1 %v1825_v50, %s1494_s26  ;;  %915 = vrot.lane.b32.xlu0 %v1840_v58, %s2236_s15 }
 0x2ab   : > { %756 = vrot.lane.b32.xlu1 %v1825_v50, %s1495_s28  ;;  %931 = vrot.lane.b32.xlu0 %v1840_v58, %s1498_s10  ;;  %s2173_s28 = scalar_lea.hbm %s2228_s6, %s1241_s20 }
 0x2af   : > { %772 = vrot.lane.b32.xlu1 %v1825_v50, %s1496_s29  ;;  %947 = vrot.lane.b32.xlu0 %v1840_v58, %s1499_s11  ;;  %s2181_s29 = scalar_lea.sflag [#allocation3], %s2238_s25 }
 0x2b3   : > { %1069 = vrot.lane.b32.xlu0 %v1042_v53, %s1505_s9  ;;  %848 = vrot.lane.b32.xlu1 %v825_v2, %s1500_s12 }
 0x2b7   : > { %963 = vrot.lane.b32.xlu0 %v1840_v58, %s1501_s13  ;;  %852 = vrot.lane.b32.xlu1 %v833_v61, %s1500_s12 }
 0x2bb   : > { %979 = vrot.lane.b32.xlu0 %v1840_v58, %s1502_s14  ;;  %917 = vrot.lane.b32.xlu1 %v1852_v62, %s2236_s15  ;;  %s1166_s15 = sshll.u32 %s1783_s17, 4  ;;  %s2175_s15 = int_to_ptr.vmem [resolvable:$true] %s1166_s15 }
 0x2bf   : > { %995 = vrot.lane.b32.xlu0 %v1840_v58, %s1503_s18  ;;  %933 = vrot.lane.b32.xlu1 %v1852_v62, %s1498_s10  ;;  %s1506_s10 = smov [#allocation2]  }
 0x2c3   : > { %1071 = vrot.lane.b32.xlu1 %v1046_v7, %s1505_s9  ;;  %846 = vrot.lane.b32.xlu0 %v821_v3, %s1500_s12 }
 0x2c7   : > { %1075 = vrot.lane.b32.xlu1 %v1054_v49, %s1505_s9  ;;  %850 = vrot.lane.b32.xlu0 %v829_v63, %s1500_s12 }
 0x2cb   : > { %949 = vrot.lane.b32.xlu1 %v1852_v62, %s1499_s11  ;;  %1073 = vrot.lane.b32.xlu0 %v1050_v8, %s1505_s9  ;;  %s1415_s11 = sshll.u32 %s1506_s10, 4  ;;  %s1416_s11 = int_to_ptr.vmem [resolvable:$false] %s1415_s11 }
 0x2cc   : > { %p1418_p0 = scmp.lt.s32.totalorder %s2175_s15, %s1416_s11 }
 0x2cd   : > { %v703_v0 = vpop.permute.xlu0 %702  ;;  %v687_v16 = vpop.permute.xlu1 %686 }
 0x2ce   : > { %714 = vst.msk [vmem:[%s1783_s17 + $0x2] sm:$0x1] %vm665_vm2, %v703_v0  ;;  %698 = vst.msk [vmem:[%s1783_s17 + $0x1] sm:$0x1] %vm665_vm2, %v687_v16 }
 0x2cf   : > { %965 = vrot.lane.b32.xlu1 %v1852_v62, %s1501_s13  ;;  %1077 = vrot.lane.b32.xlu0 %v1058_v11, %s1505_s9 }
 0x2d1   : > { %v719_v17 = vpop.permute.xlu0 %718  ;;  %v689_v19 = vpop.permute.xlu1 %688 }
 0x2d2   : > { %730 = vst.msk [vmem:[%s1783_s17 + $0x3] sm:$0x1] %vm665_vm2, %v719_v17  ;;  %699 = vst.msk [vmem:[%s1783_s17 + $0x11] sm:$0x1] %vm665_vm2, %v689_v19 }
 0x2d3   : > { %981 = vrot.lane.b32.xlu1 %v1852_v62, %s1502_s14  ;;  %854 = vrot.lane.b32.xlu0 %v837_v12, %s1500_s12 }
 0x2d5   : > { %v735_v20 = vpop.permute.xlu0 %734  ;;  %v705_v21 = vpop.permute.xlu1 %704 }
 0x2d6   : > { %746 = vst.msk [vmem:[%s1783_s17 + $0x4] sm:$0x1] %vm665_vm2, %v735_v20  ;;  %715 = vst.msk [vmem:[%s1783_s17 + $0x12] sm:$0x1] %vm665_vm2, %v705_v21 }
 0x2d7   : > { %997 = vrot.lane.b32.xlu1 %v1852_v62, %s1503_s18  ;;  %1081 = vrot.lane.b32.xlu0 %v1066_v14, %s1505_s9 }
 0x2d9   : > { %v751_v5 = vpop.permute.xlu0 %750  ;;  %v721_v22 = vpop.permute.xlu1 %720 }
 0x2da   : > { %762 = vst.msk [vmem:[%s1783_s17 + $0x5] sm:$0x1] %vm665_vm2, %v751_v5  ;;  %731 = vst.msk [vmem:[%s1783_s17 + $0x13] sm:$0x1] %vm665_vm2, %v721_v22 }
 0x2db   : > { %856 = vrot.lane.b32.xlu1 %v841_v13, %s1500_s12  ;;  %1140 = vrot.lane.b32.xlu0 %v1864_v54, %s2237_s16  ;;  %s1417_s12 = scalar_lea.vmem %s1416_s11, 2048 }
 0x2dd   : > { %v767_v39 = vpop.permute.xlu0 %766  ;;  %v737_v23 = vpop.permute.xlu1 %736 }
 0x2de   : > { %778 = vst.msk [vmem:[%s1783_s17 + $0x6] sm:$0x1] %vm665_vm2, %v767_v39  ;;  %747 = vst.msk [vmem:[%s1783_s17 + $0x14] sm:$0x1] %vm665_vm2, %v737_v23 }
 0x2df   : > { %1079 = vrot.lane.b32.xlu1 %v1062_v15, %s1505_s9  ;;  %s1411_s9 = scalar_lea.vmem %s2175_s15, 1024 }
 0x2e0   : > { %p1412_p11 = scmp.ne.s32.totalorder %s2175_s15, %s1411_s9  ;;  %p1419_p1 = scmp.lt.s32.totalorder %s1417_s12, %s1411_s9 }
 0x2e1   : > { %v753_v24 = vpop.permute.xlu1 %752  ;;  %v912_v25 = vpop.permute.xlu0 %911 }
 0x2e2   : > { %763 = vst.msk [vmem:[%s1783_s17 + $0x15] sm:$0x1] %vm665_vm2, %v753_v24  ;;  %923 = vst.msk [vmem:[%s1783_s17 + $0x8] sm:$0x1] %vm665_vm2, %v912_v25  ;;  %p1413_p12 = pnand %p1412_p11, %p1582_p5  ;;  %p1420_p2 = por %p1419_p1, %p1418_p0 }
 0x2e3   : > { %1142 = vrot.lane.b32.xlu1 %v1875_v6, %s2237_s16 }
 0x2e4   : > { %p1414_p13 = pneg %p1413_p12 }
 0x2e5   : > { %v769_v26 = vpop.permute.xlu1 %768  ;;  %v928_v27 = vpop.permute.xlu0 %927 }
 0x2e6   : > { %779 = vst.msk [vmem:[%s1783_s17 + $0x16] sm:$0x1] %vm665_vm2, %v769_v26  ;;  %939 = vst.msk [vmem:[%s1783_s17 + $0x9] sm:$0x1] %vm665_vm2, %v928_v27  ;;  %p1421_p3 = pnand %p1420_p2, %p1414_p13 }
 0x2e9   : > { %v944_v18 = vpop.permute.xlu0 %943  ;;  %v845_v28 = vpop.permute.xlu1 %844 }
 0x2ea   : > { %955 = vst.msk [vmem:[%s1783_s17 + $0xa] sm:$0x1] %vm665_vm2, %v944_v18 }
 0x2ed   : > { %v960_v29 = vpop.permute.xlu0 %959  ;;  %v914_v30 = vpop.permute.xlu1 %913 }
 0x2ee   : > { %971 = vst.msk [vmem:[%s1783_s17 + $0xb] sm:$0x1] %vm665_vm2, %v960_v29  ;;  %924 = vst.msk [vmem:[%s1783_s17 + $0x18] sm:$0x1] %vm665_vm2, %v914_v30 }
 0x2f1   : > { %v976_v31 = vpop.permute.xlu0 %975  ;;  %v930_v32 = vpop.permute.xlu1 %929 }
 0x2f2   : > { %987 = vst.msk [vmem:[%s1783_s17 + $0xc] sm:$0x1] %vm665_vm2, %v976_v31  ;;  %940 = vst.msk [vmem:[%s1783_s17 + $0x19] sm:$0x1] %vm665_vm2, %v930_v32 }
 0x2f5   : > { %v992_v33 = vpop.permute.xlu0 %991  ;;  %v946_v35 = vpop.permute.xlu1 %945 }
 0x2f6   : > { %1003 = vst.msk [vmem:[%s1783_s17 + $0xd] sm:$0x1] %vm665_vm2, %v992_v33  ;;  %956 = vst.msk [vmem:[%s1783_s17 + $0x1a] sm:$0x1] %vm665_vm2, %v946_v35 }
 0x2f9   : > { %v1137_v36 = vpop.permute.xlu0 %1136  ;;  %v1068_v37 = vpop.permute.xlu1 %1067 }
 0x2fa   : > { %1148 = vst.msk [vmem:[%s1783_s17 + $0xf] sm:$0x1] %vm665_vm2, %v1137_v36 }
 0x2fd   : > { %v691_v38 = vpop.permute.xlu0 %690  ;;  %v962_v40 = vpop.permute.xlu1 %961 }
 0x2fe   : > { %700 = vst.msk [vmem:[%s1783_s17 + $0x21] sm:$0x1] %vm665_vm2, %v691_v38  ;;  %972 = vst.msk [vmem:[%s1783_s17 + $0x1b] sm:$0x1] %vm665_vm2, %v962_v40 }
 0x301   : > { %v707_v34 = vpop.permute.xlu0 %706  ;;  %v978_v41 = vpop.permute.xlu1 %977 }
 0x302   : > { %716 = vst.msk [vmem:[%s1783_s17 + $0x22] sm:$0x1] %vm665_vm2, %v707_v34  ;;  %988 = vst.msk [vmem:[%s1783_s17 + $0x1c] sm:$0x1] %vm665_vm2, %v978_v41 }
 0x305   : > { %v723_v42 = vpop.permute.xlu0 %722  ;;  %v994_v43 = vpop.permute.xlu1 %993 }
 0x306   : > { %732 = vst.msk [vmem:[%s1783_s17 + $0x23] sm:$0x1] %vm665_vm2, %v723_v42  ;;  %1004 = vst.msk [vmem:[%s1783_s17 + $0x1d] sm:$0x1] %vm665_vm2, %v994_v43 }
 0x309   : > { %v739_v44 = vpop.permute.xlu0 %738  ;;  %v1139_v46 = vpop.permute.xlu1 %1138 }
 0x30a   : > { %748 = vst.msk [vmem:[%s1783_s17 + $0x24] sm:$0x1] %vm665_vm2, %v739_v44  ;;  %1149 = vst.msk [vmem:[%s1783_s17 + $0x1f] sm:$0x1] %vm665_vm2, %v1139_v46 }
 0x30d   : > { %v755_v47 = vpop.permute.xlu0 %754  ;;  %v693_v48 = vpop.permute.xlu1 %692 }
 0x30e   : > { %764 = vst.msk [vmem:[%s1783_s17 + $0x25] sm:$0x1] %vm665_vm2, %v755_v47  ;;  %701 = vst.msk [vmem:[%s1783_s17 + $0x31] sm:$0x1] %vm665_vm2, %v693_v48 }
 0x311   : > { %v771_v50 = vpop.permute.xlu0 %770  ;;  %v709_v51 = vpop.permute.xlu1 %708 }
 0x312   : > { %780 = vst.msk [vmem:[%s1783_s17 + $0x26] sm:$0x1] %vm665_vm2, %v771_v50  ;;  %717 = vst.msk [vmem:[%s1783_s17 + $0x32] sm:$0x1] %vm665_vm2, %v709_v51 }
 0x315   : > { %v725_v52 = vpop.permute.xlu1 %724  ;;  %v843_v53 = vpop.permute.xlu0 %842 }
 0x316   : > { %733 = vst.msk [vmem:[%s1783_s17 + $0x33] sm:$0x1] %vm665_vm2, %v725_v52  ;;  %v859_v56 = vsel %vm858_vm3, %v843_v53, %v845_v28 }
 0x317   : > { %867 = vst.msk [vmem:[%s1783_s17 + $0x7] sm:$0x1] %vm665_vm2, %v859_v56 }
 0x319   : > { %v741_v57 = vpop.permute.xlu1 %740  ;;  %v916_v45 = vpop.permute.xlu0 %915 }
 0x31a   : > { %749 = vst.msk [vmem:[%s1783_s17 + $0x34] sm:$0x1] %vm665_vm2, %v741_v57  ;;  %925 = vst.msk [vmem:[%s1783_s17 + $0x28] sm:$0x1] %vm665_vm2, %v916_v45 }
 0x31d   : > { %v757_v58 = vpop.permute.xlu1 %756  ;;  %v932_v59 = vpop.permute.xlu0 %931 }
 0x31e   : > { %765 = vst.msk [vmem:[%s1783_s17 + $0x35] sm:$0x1] %vm665_vm2, %v757_v58  ;;  %941 = vst.msk [vmem:[%s1783_s17 + $0x29] sm:$0x1] %vm665_vm2, %v932_v59 }
 0x321   : > { %v773_v55 = vpop.permute.xlu1 %772  ;;  %v948_v60 = vpop.permute.xlu0 %947 }
 0x322   : > { %781 = vst.msk [vmem:[%s1783_s17 + $0x36] sm:$0x1] %vm665_vm2, %v773_v55  ;;  %957 = vst.msk [vmem:[%s1783_s17 + $0x2a] sm:$0x1] %vm665_vm2, %v948_v60 }
 0x325   : > { %v1070_v61 = vpop.permute.xlu0 %1069  ;;  %v849_v62 = vpop.permute.xlu1 %848 }
 0x326   : > { %v1084_v63 = vsel %vm1083_vm5, %v1068_v37, %v1070_v61 }
 0x327   : > { %1092 = vst.msk [vmem:[%s1783_s17 + $0xe] sm:$0x1] %vm665_vm2, %v1084_v63 }
 0x329   : > { %v964_v1 = vpop.permute.xlu0 %963  ;;  %v853_v49 = vpop.permute.xlu1 %852 }
 0x32a   : > { %973 = vst.msk [vmem:[%s1783_s17 + $0x2b] sm:$0x1] %vm665_vm2, %v964_v1 }
 0x32d   : > { %v980_v11 = vpop.permute.xlu0 %979  ;;  %v918_v54 = vpop.permute.xlu1 %917 }
 0x32e   : > { %989 = vst.msk [vmem:[%s1783_s17 + $0x2c] sm:$0x1] %vm665_vm2, %v980_v11  ;;  %926 = vst.msk [vmem:[%s1783_s17 + $0x38] sm:$0x1] %vm665_vm2, %v918_v54 }
 0x331   : > { %v996_v2 = vpop.permute.xlu0 %995  ;;  %v934_v3 = vpop.permute.xlu1 %933 }
 0x332   : > { %1005 = vst.msk [vmem:[%s1783_s17 + $0x2d] sm:$0x1] %vm665_vm2, %v996_v2  ;;  %942 = vst.msk [vmem:[%s1783_s17 + $0x39] sm:$0x1] %vm665_vm2, %v934_v3 }
 0x335   : > { %v1072_v4 = vpop.permute.xlu1 %1071  ;;  %v847_v6 = vpop.permute.xlu0 %846 }
 0x336   : > { %v860_v7 = vsel %vm858_vm3, %v847_v6, %v849_v62 }
 0x337   : > { %868 = vst.msk [vmem:[%s1783_s17 + $0x17] sm:$0x1] %vm665_vm2, %v860_v7 }
 0x339   : > { %v1076_v8 = vpop.permute.xlu1 %1075  ;;  %v851_v9 = vpop.permute.xlu0 %850 }
 0x33a   : > { %v861_v12 = vsel %vm858_vm3, %v851_v9, %v853_v49 }
 0x33b   : > { %869 = vst.msk [vmem:[%s1783_s17 + $0x27] sm:$0x1] %vm665_vm2, %v861_v12 }
 0x33d   : > { %v950_v13 = vpop.permute.xlu1 %949  ;;  %v1074_v14 = vpop.permute.xlu0 %1073 }
 0x33e   : > { %958 = vst.msk [vmem:[%s1783_s17 + $0x3a] sm:$0x1] %vm665_vm2, %v950_v13  ;;  %v1085_v15 = vsel %vm1083_vm5, %v1072_v4, %v1074_v14 }
 0x33f   : > { %1093 = vst.msk [vmem:[%s1783_s17 + $0x1e] sm:$0x1] %vm665_vm2, %v1085_v15 }
 0x341   : > { %v966_v10 = vpop.permute.xlu1 %965  ;;  %v1078_v0 = vpop.permute.xlu0 %1077 }
 0x342   : > { %974 = vst.msk [vmem:[%s1783_s17 + $0x3b] sm:$0x1] %vm665_vm2, %v966_v10  ;;  %v1086_v16 = vsel %vm1083_vm5, %v1076_v8, %v1078_v0 }
 0x343   : > { %1094 = vst.msk [vmem:[%s1783_s17 + $0x2e] sm:$0x1] %vm665_vm2, %v1086_v16 }
 0x345   : > { %v982_v17 = vpop.permute.xlu1 %981  ;;  %v855_v19 = vpop.permute.xlu0 %854 }
 0x346   : > { %990 = vst.msk [vmem:[%s1783_s17 + $0x3c] sm:$0x1] %vm665_vm2, %v982_v17 }
 0x349   : > { %v998_v20 = vpop.permute.xlu1 %997  ;;  %v1082_v21 = vpop.permute.xlu0 %1081 }
 0x34a   : > { %1006 = vst.msk [vmem:[%s1783_s17 + $0x3d] sm:$0x1] %vm665_vm2, %v998_v20 }
 0x34d   : > { %v857_v5 = vpop.permute.xlu1 %856  ;;  %v1141_v22 = vpop.permute.xlu0 %1140 }
 0x34e   : > { %v862_v39 = vsel %vm858_vm3, %v855_v19, %v857_v5  ;;  %1150 = vst.msk [vmem:[%s1783_s17 + $0x2f] sm:$0x1] %vm665_vm2, %v1141_v22 }
 0x34f   : > { %870 = vst.msk [vmem:[%s1783_s17 + $0x37] sm:$0x1] %vm665_vm2, %v862_v39 }
 0x351   : > { %v1080_v23 = vpop.permute.xlu1 %1079 }
 0x352   : > { %v1087_v24 = vsel %vm1083_vm5, %v1080_v23, %v1082_v21 }
 0x353   : > { %1095 = vst.msk [vmem:[%s1783_s17 + $0x3e] sm:$0x1] %vm665_vm2, %v1087_v24 }
 0x355   : > { %v1143_v25 = vpop.permute.xlu1 %1142 }
 0x356   : > { %1151 = vst.msk [vmem:[%s1783_s17 + $0x3f] sm:$0x1] %vm665_vm2, %v1143_v25 }
 0x357   : > { %1424 = shalt.err (!%p1421_p3)
}
 0x358   : > { %s1425_s17 = scalar_lea.hbm %s2173_s28, 1024  ;;  %s1429_s18 = scalar_lea.hbm %s2228_s6, 2048 }
 0x359   : > { %p1426_p4 = scmp.ne.s32.totalorder %s2173_s28, %s1425_s17  ;;  %p1430_p9 = scmp.lt.u32.totalorder %s2173_s28, %s2228_s6 }
 0x35a   : > { %p1431_p10 = scmp.lt.u32.totalorder %s1429_s18, %s1425_s17  ;;  %p1433_p12 = scmp.lt.u32.totalorder %s1425_s17, %s2173_s28 }
 0x35b   : > { %p1427_p7 = pnand %p1426_p4, %p1582_p5 }
 0x35c   : > { %p1432_p11 = por %p1431_p10, %p1430_p9 }
 0x35d   : > { %p1428_p8 = pneg %p1427_p7 }
 0x35e   : > { %p1434_p13 = por %p1433_p12, %p1432_p11 }
 0x360   : > { %p1435_p0 = pnand %p1434_p13, %p1428_p8 }
 0x362   : > { %1438 = shalt.err (!%p1435_p0)
}
 0x363   : > { %s1507_s19 = smov 128   ;;  %s1508_s26 = smov 8  }
 0x364   : > { %1302 = dma.vmem_to_hbm [thread:$0]  (%p1582_p5), %s2175_s15, 1024, %s2173_s28, %s2181_s29, %s1507_s19, %s1507_s19, %s1508_s26  }
 0x365 PF: > { %p1308_p1 = scmp.ge.s32.totalorder %s1473_s24, 2  ;;  %s1181_s25 = sand.u32 1, %s1461_s21  }
 0x366   : > { %s1182_s9 = scalar_lea.sflag [#allocation3], %s1181_s25 }
 0x367   : > { %p1305_p2 = pnand %p1308_p1, %p1586_p6 }
 0x369   : > { %1456 = dma.done.wait (!%p1305_p2), %s1182_s9, 1024  }
 0x36a   : > { %1458 = vsyncadd (!%p1305_p2), %s1182_s9, 4294966272  ;;  %p16_p3 = scmp.ge.s32.totalorder %s1569_s27, 4   ;;  %s2239_s21 = smov %s1465_s22 }
 0x36b   : > { %s2240_s22 = smov %s1469_s23  ;;  %s2241_s23 = smov %s1580_s30 }
 0x36c   : > { %s2242_s24 = smov %s1569_s27  ;;  %18 = sbr.rel (!%p16_p3) target bundleno = 3 (0x3), region = 79 }
 0x373   :  { %1187 = vsyncpa [#allocation3], 1 }
 0x374   :  { %1189 = vsyncpa [#allocation3 + $0x1], 1 }

</bundles_post_ra>
